<compile_context>
chip_gen: v7x
topology: tpu7x:2x2x1
jax: 0.10.0
libtpu: 0.0.40
codegen_flags: <defaults>
</compile_context>

<pallas_src>
import functools
import math

import jax
import jax.numpy as jnp
from jax import lax
from jax.experimental import pallas as pl
from jax.experimental.pallas import tpu as pltpu


def _round_up(x, m):
    return (x + m - 1) // m * m


# -----------------------------------------------------------------------------
# Kernel: ExtendedPhi forward for a block of `bb` batch elements.
# -----------------------------------------------------------------------------
def extended_phi_kernel(v_ref, t_ref, w_ref, b_ref, o_ref,
                        *, num_heads, bb, H, Hp, eps):
    f32 = jnp.float32
    Dp = v_ref.shape[1]
    rows_v = v_ref.shape[0]
    rows_t = t_ref.shape[0]
    Op = o_ref.shape[1]
    S_v = rows_v // bb
    S_t = rows_t // bb
    hd = H // num_heads

    # ---- weight slab row offsets (all multiples of 8 -> pure window loads) ---
    r_wv = 0
    r_wt = r_wv + Dp
    r_wq = r_wt + Dp
    r_wkv = r_wq + Hp
    r_wo = r_wkv + Hp
    r_w1 = r_wo + H
    r_w2 = r_w1 + Hp

    wvT = w_ref[r_wv:r_wv + Dp, 0:Hp]
    wtT = w_ref[r_wt:r_wt + Dp, 0:Hp]
    wqT = w_ref[r_wq:r_wq + Hp, 0:Hp]          # softmax scale folded in
    wkvT = w_ref[r_wkv:r_wkv + Hp, 0:2 * Hp]   # [Wk^T | Wv^T] packed along lanes
    woT = w_ref[r_wo:r_wo + H, 0:Hp]
    w1T = w_ref[r_w1:r_w1 + Hp, 0:Hp]
    w2T = w_ref[r_w2:r_w2 + Hp, 0:Op]

    bv = b_ref[0:1, 0:Hp]
    bt = b_ref[1:2, 0:Hp]
    bq = b_ref[2:3, 0:Hp]
    bkv = b_ref[3:4, 0:2 * Hp]
    bo = b_ref[4:5, 0:Hp]
    b1 = b_ref[5:6, 0:Hp]
    b2 = b_ref[6:7, 0:Op]
    ln_g = b_ref[7:8, 0:Hp]
    ln_b = b_ref[8:9, 0:Hp]

    # ---- input projections: batch folded into the row axis, lane-dense N=Hp ---
    vis = jnp.dot(v_ref[...], wvT, preferred_element_type=f32) + bv     # (bb*S_v, Hp)
    txt = jnp.dot(t_ref[...], wtT, preferred_element_type=f32) + bt     # (bb*S_t, Hp)

    # ---- packed QKV projections (q from visual, [k|v] packed from textual) ---
    q2 = jnp.dot(vis, wqT, preferred_element_type=f32) + bq             # (bb*S_v, Hp)
    kv2 = jnp.dot(txt, wkvT, preferred_element_type=f32) + bkv          # (bb*S_t, 2Hp)
    k2 = kv2[:, 0:Hp]                                                   # 128-aligned split
    v2 = kv2[:, Hp:2 * Hp]

    # ---- head/batch re-tiling: (rows, Hp) -> (Z = nh*bb, S, hd) --------------
    # Static window slices + stack: pure layout plumbing; all compute below is a
    # single batched einsum over Z (no per-head / per-batch compute unroll).
    def split_heads(x2, S):
        return jnp.stack(
            [x2[b * S:(b + 1) * S, n * hd:(n + 1) * hd]
             for n in range(num_heads) for b in range(bb)], axis=0)     # z = n*bb + b

    qh = split_heads(q2, S_v)                                           # (Z, S_v, hd)
    kh = split_heads(k2, S_t)                                           # (Z, S_t, hd)
    vh = split_heads(v2, S_t)

    # ---- attention, batched over Z -------------------------------------------
    s = jnp.einsum('zqd,zkd->zqk', qh, kh, preferred_element_type=f32)  # (Z, S_v, S_t)
    s = s - jnp.max(s, axis=-1, keepdims=True)
    p = jnp.exp(s)
    p = p * pl.reciprocal(jnp.sum(p, axis=-1, keepdims=True), approx=False)
    o3 = jnp.einsum('zqk,zkd->zqd', p, vh, preferred_element_type=f32)  # (Z, S_v, hd)

    # ---- merge heads along lanes + ONE fused out-projection (K = H) ----------
    o_merged = jnp.concatenate(
        [jnp.concatenate([o3[n * bb + b] for n in range(num_heads)], axis=1)
         for b in range(bb)], axis=0)                                   # (bb*S_v, H)
    attn = jnp.dot(o_merged, woT, preferred_element_type=f32) + bo      # (bb*S_v, Hp)

    # ---- residual + LayerNorm over the REAL H (padded lanes are exact zeros) -
    res = attn + vis
    lane = lax.broadcasted_iota(jnp.int32, (1, Hp), 1)
    hmask = (lane < H).astype(f32)
    mu = jnp.sum(res, axis=-1, keepdims=True) * (1.0 / H)
    xc = (res - mu) * hmask
    var = jnp.sum(xc * xc, axis=-1, keepdims=True) * (1.0 / H)          # two-pass
    ln = xc * lax.rsqrt(var + eps) * ln_g + ln_b

    # ---- MLP: Linear -> GELU (exact erf) -> Dropout(eval=identity) -> Linear -
    h1 = jnp.dot(ln, w1T, preferred_element_type=f32) + b1
    g = 0.5 * h1 * (1.0 + lax.erf(h1 * (1.0 / math.sqrt(2.0))))
    out = jnp.dot(g, w2T, preferred_element_type=f32) + b2              # (bb*S_v, Op)

    o_ref[...] = out.astype(o_ref.dtype)                                # lane-dense store


# -----------------------------------------------------------------------------
# Wrapper: all layout plumbing (transpose / packing / lane padding) happens here.
# -----------------------------------------------------------------------------
def extended_phi(visual, textual, params, *, num_heads, batch_block=None,
                 single_buffer_weights=True):
    B, S_v, D_in = visual.shape
    Bt, S_t, D_in_t = textual.shape
    assert Bt == B and D_in_t == D_in
    H = params["wv"].shape[0]
    O = params["w2"].shape[0]
    hd = H // num_heads
    scale = 1.0 / math.sqrt(hd)
    f32 = jnp.float32

    if batch_block is None:
        # B//2: one big step per TensorCore on v7x; harmless on 1-TC v5e/v6e
        # (weights are block-invariant, so they are not re-fetched per step).
        batch_block = B // 2 if (B % 2 == 0 and B >= 2) else B
    assert B % batch_block == 0
    bb = batch_block

    Dp = _round_up(D_in, 128)
    Hp = _round_up(H, 128)
    Op = _round_up(O, 128)
    W = 2 * Hp

    # ---- pack all weights into ONE pre-transposed, zero-padded f32 slab ------
    def T(w):                        # torch Linear (out,in) -> x @ W layout (in,out)
        return jnp.asarray(w, f32).T

    w_in = jnp.asarray(params["w_in"], f32)
    b_in = jnp.asarray(params["b_in"], f32).reshape(3 * H)

    r_wv, r_wt = 0, Dp
    r_wq = 2 * Dp
    r_wkv = 2 * Dp + Hp
    r_wo = 2 * Dp + 2 * Hp
    r_w1 = r_wo + H
    r_w2 = r_w1 + Hp
    R = r_w2 + Hp

    w_slab = jnp.zeros((R, W), f32)
    w_slab = w_slab.at[r_wv:r_wv + D_in, :H].set(T(params["wv"]))
    w_slab = w_slab.at[r_wt:r_wt + D_in, :H].set(T(params["wt"]))
    w_slab = w_slab.at[r_wq:r_wq + H, :H].set(T(w_in[:H] * scale))      # scale folded
    w_slab = w_slab.at[r_wkv:r_wkv + H, :H].set(T(w_in[H:2 * H]))       # k
    w_slab = w_slab.at[r_wkv:r_wkv + H, Hp:Hp + H].set(T(w_in[2 * H:])) # v (packed)
    w_slab = w_slab.at[r_wo:r_wo + H, :H].set(T(params["w_out"]))
    w_slab = w_slab.at[r_w1:r_w1 + H, :H].set(T(params["w1"]))
    w_slab = w_slab.at[r_w2:r_w2 + H, :O].set(T(params["w2"]))
    # TODO(synk): for production H on v6e/v7x cast w_slab/b_slab to bf16 and K-tile
    # the MLP weights over an "arbitrary" grid axis; kept f32 for tight tolerance.

    def vec(v):
        return jnp.asarray(v, f32).reshape(-1)

    b_slab = jnp.zeros((9, W), f32)
    b_slab = b_slab.at[0, :H].set(vec(params["bv"]))
    b_slab = b_slab.at[1, :H].set(vec(params["bt"]))
    b_slab = b_slab.at[2, :H].set(vec(b_in[:H]) * scale)                # scale folded
    b_slab = b_slab.at[3, :H].set(vec(b_in[H:2 * H]))
    b_slab = b_slab.at[3, Hp:Hp + H].set(vec(b_in[2 * H:]))
    b_slab = b_slab.at[4, :H].set(vec(params["b_out"]))
    b_slab = b_slab.at[5, :H].set(vec(params["b1"]))
    b_slab = b_slab.at[6, :O].set(vec(params["b2"]))
    b_slab = b_slab.at[7, :H].set(vec(params["ln_g"]))
    b_slab = b_slab.at[8, :H].set(vec(params["ln_b"]))

    # ---- lane-pad inputs and flatten batch into rows --------------------------
    def flat_pad(x, S):
        x = jnp.asarray(x, f32).reshape(B * S, D_in)
        return jnp.pad(x, ((0, 0), (0, Dp - D_in)))

    v_flat = flat_pad(visual, S_v)
    t_flat = flat_pad(textual, S_t)

    kernel = functools.partial(extended_phi_kernel, num_heads=num_heads,
                               bb=bb, H=H, Hp=Hp, eps=1e-5)

    block_bytes = 4 * (bb * S_v * Dp + bb * S_t * Dp + bb * S_v * Op
                       + w_slab.size + b_slab.size)
    vmem_limit = int(min(max(2 * block_bytes + (8 << 20), 32 << 20), 64 << 20))

    grid = (B // bb,)

    def build(single_buffer):
        def const_spec(a):
            nd = a.ndim
            if single_buffer:
                try:   # grid-invariant weight slabs: single VMEM buffer
                    return pl.BlockSpec(a.shape, lambda *_: (0,) * nd,
                                        pipeline_mode=pl.Buffered(1))
                except TypeError:
                    pass
            return pl.BlockSpec(a.shape, lambda *_: (0,) * nd)

        return pl.pallas_call(
            kernel,
            out_shape=jax.ShapeDtypeStruct((B * S_v, Op), jnp.float32),
            grid=grid,
            in_specs=[
                pl.BlockSpec((bb * S_v, Dp), lambda i: (i, 0)),
                pl.BlockSpec((bb * S_t, Dp), lambda i: (i, 0)),
                const_spec(w_slab),
                const_spec(b_slab),
            ],
            out_specs=pl.BlockSpec((bb * S_v, Op), lambda i: (i, 0)),
            compiler_params=pltpu.CompilerParams(
                dimension_semantics=("parallel",),
                vmem_limit_bytes=vmem_limit),
        )

    if single_buffer_weights:
        try:
            out_flat = build(True)(v_flat, t_flat, w_slab, b_slab)
        except Exception:   # fall back to default (double-buffered) weight specs
            out_flat = build(False)(v_flat, t_flat, w_slab, b_slab)
    else:
        out_flat = build(False)(v_flat, t_flat, w_slab, b_slab)

    return out_flat[:, :O].reshape(B, S_v, O)


# -----------------------------------------------------------------------------
# Pure-JAX reference (for correctness check) — batch-first convention.
# -----------------------------------------------------------------------------
def extended_phi_ref(visual, textual, params, *, num_heads):
    def lin(x, w, b):
        return x @ w.T + b

    vis = lin(visual, params["wv"], params["bv"])
    txt = lin(textual, params["wt"], params["bt"])
    H = vis.shape[-1]
    hd = H // num_heads
    w_in, b_in = params["w_in"], params["b_in"]
    q = lin(vis, w_in[:H], b_in[:, :H])
    k = lin(txt, w_in[H:2 * H], b_in[:, H:2 * H])
    v = lin(txt, w_in[2 * H:], b_in[:, 2 * H:])
    B, S_v, _ = q.shape
    S_t = k.shape[1]
    qh = q.reshape(B, S_v, num_heads, hd).transpose(0, 2, 1, 3)
    kh = k.reshape(B, S_t, num_heads, hd).transpose(0, 2, 1, 3)
    vh = v.reshape(B, S_t, num_heads, hd).transpose(0, 2, 1, 3)
    s = jnp.einsum("bhqd,bhkd->bhqk", qh, kh) / math.sqrt(hd)
    p = jax.nn.softmax(s, axis=-1)
    o = jnp.einsum("bhqk,bhkd->bhqd", p, vh).transpose(0, 2, 1, 3).reshape(B, S_v, H)
    attn = lin(o, params["w_out"], params["b_out"])
    res = attn + vis
    mu = res.mean(-1, keepdims=True)
    var = ((res - mu) ** 2).mean(-1, keepdims=True)
    ln = (res - mu) / jnp.sqrt(var + 1e-5) * params["ln_g"] + params["ln_b"]
    h1 = lin(ln, params["w1"], params["b1"])
    g = jax.nn.gelu(h1, approximate=False)
    return lin(g, params["w2"], params["b2"])


# -----------------------------------------------------------------------------
# Deterministic parameter construction (synthetic; no checkpoint loading)
# -----------------------------------------------------------------------------
def make_params(key, input_dim, hidden_dim, output_dim):
    ks = jax.random.split(key, 16)
    u = lambda k, shape, s: (jax.random.uniform(k, shape, jnp.float32) - 0.5) * 2 * s
    return {
        "wv":   u(ks[0], (hidden_dim, input_dim), 0.1),
        "bv":   u(ks[1], (1, hidden_dim), 0.1),
        "wt":   u(ks[2], (hidden_dim, input_dim), 0.1),
        "bt":   u(ks[3], (1, hidden_dim), 0.1),
        "w_in": u(ks[4], (3 * hidden_dim, hidden_dim), 0.1),
        "b_in": u(ks[5], (1, 3 * hidden_dim), 0.1),
        "w_out": u(ks[6], (hidden_dim, hidden_dim), 0.1),
        "b_out": u(ks[7], (1, hidden_dim), 0.1),
        "ln_g": 1.0 + u(ks[8], (1, hidden_dim), 0.05),
        "ln_b": u(ks[9], (1, hidden_dim), 0.05),
        "w1":   u(ks[10], (hidden_dim, hidden_dim), 0.1),
        "b1":   u(ks[11], (1, hidden_dim), 0.1),
        "w2":   u(ks[12], (output_dim, hidden_dim), 0.1),
        "b2":   u(ks[13], (1, output_dim), 0.1),
    }


if __name__ == "__main__":
    B, S_v, S_t = 2, 8, 8
    input_dim, hidden_dim, output_dim, num_heads = 32, 32, 32, 4

    key = jax.random.PRNGKey(0)
    kv_, kt_, kp_ = jax.random.split(key, 3)
    visual = jax.random.normal(kv_, (B, S_v, input_dim), jnp.float32)
    textual = jax.random.normal(kt_, (B, S_t, input_dim), jnp.float32)
    params = make_params(kp_, input_dim, hidden_dim, output_dim)

    ref = extended_phi_ref(visual, textual, params, num_heads=num_heads)

    # Default: batch_block = B//2 -> grid=(2,), "parallel" (both TCs busy on v7x).
    out = jax.block_until_ready(
        extended_phi(visual, textual, params, num_heads=num_heads))
    assert out.shape == (B, S_v, output_dim)
    assert jnp.allclose(out, ref, atol=2e-4, rtol=2e-4), "mismatch (default grid)"

    # Whole batch fused into one grid step (bb>1 path: batch folded into matmul rows).
    out2 = jax.block_until_ready(
        extended_phi(visual, textual, params, num_heads=num_heads, batch_block=B))
    assert jnp.allclose(out2, ref, atol=2e-4, rtol=2e-4), "mismatch (fused batch)"

    print("KERNEL_OK")
</pallas_src>

<mosaic_0001>
module attributes {stable_mosaic.version = 11 : i64} {
  func.func @extended_phi_kernel(%arg0: i32, %arg1: memref<8x128xf32, #tpu.memory_space<vmem>>, %arg2: memref<8x128xf32, #tpu.memory_space<vmem>>, %arg3: memref<800x256xf32, #tpu.memory_space<vmem>>, %arg4: memref<9x256xf32, #tpu.memory_space<vmem>>, %arg5: memref<8x128xf32, #tpu.memory_space<vmem>>) attributes {dimension_semantics = [#tpu.dimension_semantics<parallel>], iteration_bounds = array<i64: 2>, scalar_prefetch = 0 : i64, scratch_operands = 0 : i64, tpu.core_type = #tpu.core_type<tc>, window_params = [{transform_indices = @transform_0, window_bounds = array<i64: 8, 128>}, {transform_indices = @transform_1, window_bounds = array<i64: 8, 128>}, {pipeline_mode = #tpu.pipeline_mode<synchronous>, transform_indices = @transform_2, window_bounds = array<i64: 800, 256>}, {pipeline_mode = #tpu.pipeline_mode<synchronous>, transform_indices = @transform_3, window_bounds = array<i64: 9, 256>}, {transform_indices = @transform_4, window_bounds = array<i64: 8, 128>}]} {
    %c0 = arith.constant 0 : index
    %c0_0 = arith.constant 0 : index
    %0 = vector.load %arg3[%c0, %c0_0] : memref<800x256xf32, #tpu.memory_space<vmem>>, vector<128x128xf32>
    %c128 = arith.constant 128 : index
    %c0_1 = arith.constant 0 : index
    %1 = vector.load %arg3[%c128, %c0_1] : memref<800x256xf32, #tpu.memory_space<vmem>>, vector<128x128xf32>
    %c256 = arith.constant 256 : index
    %c0_2 = arith.constant 0 : index
    %2 = vector.load %arg3[%c256, %c0_2] : memref<800x256xf32, #tpu.memory_space<vmem>>, vector<128x128xf32>
    %c384 = arith.constant 384 : index
    %c0_3 = arith.constant 0 : index
    %3 = vector.load %arg3[%c384, %c0_3] : memref<800x256xf32, #tpu.memory_space<vmem>>, vector<128x256xf32>
    %c512 = arith.constant 512 : index
    %c0_4 = arith.constant 0 : index
    %4 = vector.load %arg3[%c512, %c0_4] : memref<800x256xf32, #tpu.memory_space<vmem>>, vector<32x128xf32>
    %c544 = arith.constant 544 : index
    %c0_5 = arith.constant 0 : index
    %5 = vector.load %arg3[%c544, %c0_5] : memref<800x256xf32, #tpu.memory_space<vmem>>, vector<128x128xf32>
    %c672 = arith.constant 672 : index
    %c0_6 = arith.constant 0 : index
    %6 = vector.load %arg3[%c672, %c0_6] : memref<800x256xf32, #tpu.memory_space<vmem>>, vector<128x128xf32>
    %c0_7 = arith.constant 0 : index
    %c0_8 = arith.constant 0 : index
    %7 = vector.load %arg4[%c0_7, %c0_8] : memref<9x256xf32, #tpu.memory_space<vmem>>, vector<1x128xf32>
    %c1 = arith.constant 1 : index
    %c0_9 = arith.constant 0 : index
    %8 = vector.load %arg4[%c1, %c0_9] : memref<9x256xf32, #tpu.memory_space<vmem>>, vector<1x128xf32>
    %c2 = arith.constant 2 : index
    %c0_10 = arith.constant 0 : index
    %9 = vector.load %arg4[%c2, %c0_10] : memref<9x256xf32, #tpu.memory_space<vmem>>, vector<1x128xf32>
    %c3 = arith.constant 3 : index
    %c0_11 = arith.constant 0 : index
    %10 = vector.load %arg4[%c3, %c0_11] : memref<9x256xf32, #tpu.memory_space<vmem>>, vector<1x256xf32>
    %c4 = arith.constant 4 : index
    %c0_12 = arith.constant 0 : index
    %11 = vector.load %arg4[%c4, %c0_12] : memref<9x256xf32, #tpu.memory_space<vmem>>, vector<1x128xf32>
    %c5 = arith.constant 5 : index
    %c0_13 = arith.constant 0 : index
    %12 = vector.load %arg4[%c5, %c0_13] : memref<9x256xf32, #tpu.memory_space<vmem>>, vector<1x128xf32>
    %c6 = arith.constant 6 : index
    %c0_14 = arith.constant 0 : index
    %13 = vector.load %arg4[%c6, %c0_14] : memref<9x256xf32, #tpu.memory_space<vmem>>, vector<1x128xf32>
    %c7 = arith.constant 7 : index
    %c0_15 = arith.constant 0 : index
    %14 = vector.load %arg4[%c7, %c0_15] : memref<9x256xf32, #tpu.memory_space<vmem>>, vector<1x128xf32>
    %c8 = arith.constant 8 : index
    %c0_16 = arith.constant 0 : index
    %15 = vector.load %arg4[%c8, %c0_16] : memref<9x256xf32, #tpu.memory_space<vmem>>, vector<1x128xf32>
    %c0_17 = arith.constant 0 : index
    %c0_18 = arith.constant 0 : index
    %16 = vector.load %arg1[%c0_17, %c0_18] : memref<8x128xf32, #tpu.memory_space<vmem>>, vector<8x128xf32>
    %cst = arith.constant dense<0.000000e+00> : vector<8x128xf32>
    %17 = tpu.matmul %16, %0, %cst {dimension_numbers = #tpu.dot_dimension_numbers<[1], [0], [0], [1], [0, 0, 1, 1], [], []>} : vector<8x128xf32>, vector<128x128xf32>, vector<8x128xf32> -> vector<8x128xf32>
    %18 = vector.broadcast %7 : vector<1x128xf32> to vector<8x128xf32>
    %19 = arith.addf %17, %18 : vector<8x128xf32>
    %c0_19 = arith.constant 0 : index
    %c0_20 = arith.constant 0 : index
    %20 = vector.load %arg2[%c0_19, %c0_20] : memref<8x128xf32, #tpu.memory_space<vmem>>, vector<8x128xf32>
    %cst_21 = arith.constant dense<0.000000e+00> : vector<8x128xf32>
    %21 = tpu.matmul %20, %1, %cst_21 {dimension_numbers = #tpu.dot_dimension_numbers<[1], [0], [0], [1], [0, 0, 1, 1], [], []>} : vector<8x128xf32>, vector<128x128xf32>, vector<8x128xf32> -> vector<8x128xf32>
    %22 = vector.broadcast %8 : vector<1x128xf32> to vector<8x128xf32>
    %23 = arith.addf %21, %22 : vector<8x128xf32>
    %cst_22 = arith.constant dense<0.000000e+00> : vector<8x128xf32>
    %24 = tpu.matmul %19, %2, %cst_22 {dimension_numbers = #tpu.dot_dimension_numbers<[1], [0], [0], [1], [0, 0, 1, 1], [], []>} : vector<8x128xf32>, vector<128x128xf32>, vector<8x128xf32> -> vector<8x128xf32>
    %25 = vector.broadcast %9 : vector<1x128xf32> to vector<8x128xf32>
    %26 = arith.addf %24, %25 : vector<8x128xf32>
    %cst_23 = arith.constant dense<0.000000e+00> : vector<8x256xf32>
    %27 = tpu.matmul %23, %3, %cst_23 {dimension_numbers = #tpu.dot_dimension_numbers<[1], [0], [0], [1], [0, 0, 1, 1], [], []>} : vector<8x128xf32>, vector<128x256xf32>, vector<8x256xf32> -> vector<8x256xf32>
    %28 = vector.broadcast %10 : vector<1x256xf32> to vector<8x256xf32>
    %29 = arith.addf %27, %28 : vector<8x256xf32>
    %30 = vector.extract_strided_slice %29 {offsets = [0, 0], sizes = [8, 128], strides = [1, 1]} : vector<8x256xf32> to vector<8x128xf32>
    %31 = vector.extract_strided_slice %29 {offsets = [0, 128], sizes = [8, 128], strides = [1, 1]} : vector<8x256xf32> to vector<8x128xf32>
    %32 = vector.extract_strided_slice %26 {offsets = [0, 0], sizes = [8, 8], strides = [1, 1]} : vector<8x128xf32> to vector<8x8xf32>
    %33 = vector.extract_strided_slice %26 {offsets = [0, 8], sizes = [8, 8], strides = [1, 1]} : vector<8x128xf32> to vector<8x8xf32>
    %34 = vector.extract_strided_slice %26 {offsets = [0, 16], sizes = [8, 8], strides = [1, 1]} : vector<8x128xf32> to vector<8x8xf32>
    %35 = vector.extract_strided_slice %26 {offsets = [0, 24], sizes = [8, 8], strides = [1, 1]} : vector<8x128xf32> to vector<8x8xf32>
    %36 = vector.shape_cast %32 : vector<8x8xf32> to vector<1x8x8xf32>
    %37 = vector.shape_cast %33 : vector<8x8xf32> to vector<1x8x8xf32>
    %38 = vector.shape_cast %34 : vector<8x8xf32> to vector<1x8x8xf32>
    %39 = vector.shape_cast %35 : vector<8x8xf32> to vector<1x8x8xf32>
    %40 = tpu.concatenate %36, %37, %38, %39 in 0 : vector<1x8x8xf32>, vector<1x8x8xf32>, vector<1x8x8xf32>, vector<1x8x8xf32> -> vector<4x8x8xf32>
    %41 = vector.extract_strided_slice %30 {offsets = [0, 0], sizes = [8, 8], strides = [1, 1]} : vector<8x128xf32> to vector<8x8xf32>
    %42 = vector.extract_strided_slice %30 {offsets = [0, 8], sizes = [8, 8], strides = [1, 1]} : vector<8x128xf32> to vector<8x8xf32>
    %43 = vector.extract_strided_slice %30 {offsets = [0, 16], sizes = [8, 8], strides = [1, 1]} : vector<8x128xf32> to vector<8x8xf32>
    %44 = vector.extract_strided_slice %30 {offsets = [0, 24], sizes = [8, 8], strides = [1, 1]} : vector<8x128xf32> to vector<8x8xf32>
    %45 = vector.shape_cast %41 : vector<8x8xf32> to vector<1x8x8xf32>
    %46 = vector.shape_cast %42 : vector<8x8xf32> to vector<1x8x8xf32>
    %47 = vector.shape_cast %43 : vector<8x8xf32> to vector<1x8x8xf32>
    %48 = vector.shape_cast %44 : vector<8x8xf32> to vector<1x8x8xf32>
    %49 = tpu.concatenate %45, %46, %47, %48 in 0 : vector<1x8x8xf32>, vector<1x8x8xf32>, vector<1x8x8xf32>, vector<1x8x8xf32> -> vector<4x8x8xf32>
    %50 = vector.extract_strided_slice %31 {offsets = [0, 0], sizes = [8, 8], strides = [1, 1]} : vector<8x128xf32> to vector<8x8xf32>
    %51 = vector.extract_strided_slice %31 {offsets = [0, 8], sizes = [8, 8], strides = [1, 1]} : vector<8x128xf32> to vector<8x8xf32>
    %52 = vector.extract_strided_slice %31 {offsets = [0, 16], sizes = [8, 8], strides = [1, 1]} : vector<8x128xf32> to vector<8x8xf32>
    %53 = vector.extract_strided_slice %31 {offsets = [0, 24], sizes = [8, 8], strides = [1, 1]} : vector<8x128xf32> to vector<8x8xf32>
    %54 = vector.shape_cast %50 : vector<8x8xf32> to vector<1x8x8xf32>
    %55 = vector.shape_cast %51 : vector<8x8xf32> to vector<1x8x8xf32>
    %56 = vector.shape_cast %52 : vector<8x8xf32> to vector<1x8x8xf32>
    %57 = vector.shape_cast %53 : vector<8x8xf32> to vector<1x8x8xf32>
    %58 = tpu.concatenate %54, %55, %56, %57 in 0 : vector<1x8x8xf32>, vector<1x8x8xf32>, vector<1x8x8xf32>, vector<1x8x8xf32> -> vector<4x8x8xf32>
    "tpu.trace_start"() <{level = 10 : i32, message = "zqd,zkd->zqk"}> : () -> ()
    %cst_24 = arith.constant dense<0.000000e+00> : vector<4x8x8xf32>
    %59 = tpu.matmul %40, %49, %cst_24 {dimension_numbers = #tpu.dot_dimension_numbers<[2], [2], [1], [1], [0, 0, 0, 1, 1, 1], [0], [0]>} : vector<4x8x8xf32>, vector<4x8x8xf32>, vector<4x8x8xf32> -> vector<4x8x8xf32>
    "tpu.trace_stop"() : () -> ()
    %cst_25 = arith.constant dense<0xFF800000> : vector<4x8xf32>
    %60 = vector.multi_reduction <maximumf>, %59, %cst_25 [2] : vector<4x8x8xf32> to vector<4x8xf32>
    %61 = vector.shape_cast %60 : vector<4x8xf32> to vector<4x8x1xf32>
    %62 = vector.broadcast %61 : vector<4x8x1xf32> to vector<4x8x8xf32>
    %63 = arith.subf %59, %62 : vector<4x8x8xf32>
    %64 = math.exp %63 : vector<4x8x8xf32>
    %cst_26 = arith.constant dense<0.000000e+00> : vector<4x8xf32>
    %65 = vector.multi_reduction <add>, %64, %cst_26 [2] : vector<4x8x8xf32> to vector<4x8xf32>
    %66 = vector.shape_cast %65 : vector<4x8xf32> to vector<4x8x1xf32>
    %67 = tpu.reciprocal %66 : vector<4x8x1xf32> -> vector<4x8x1xf32>
    %68 = vector.broadcast %67 : vector<4x8x1xf32> to vector<4x8x8xf32>
    %69 = arith.mulf %64, %68 : vector<4x8x8xf32>
    "tpu.trace_start"() <{level = 10 : i32, message = "zqk,zkd->zqd"}> : () -> ()
    %cst_27 = arith.constant dense<0.000000e+00> : vector<4x8x8xf32>
    %70 = tpu.matmul %69, %58, %cst_27 {dimension_numbers = #tpu.dot_dimension_numbers<[2], [1], [1], [2], [0, 0, 0, 1, 1, 2], [0], [0]>} : vector<4x8x8xf32>, vector<4x8x8xf32>, vector<4x8x8xf32> -> vector<4x8x8xf32>
    "tpu.trace_stop"() : () -> ()
    %71 = vector.extract_strided_slice %70 {offsets = [0, 0, 0], sizes = [1, 8, 8], strides = [1, 1, 1]} : vector<4x8x8xf32> to vector<1x8x8xf32>
    %72 = vector.shape_cast %71 : vector<1x8x8xf32> to vector<8x8xf32>
    %73 = vector.extract_strided_slice %70 {offsets = [1, 0, 0], sizes = [1, 8, 8], strides = [1, 1, 1]} : vector<4x8x8xf32> to vector<1x8x8xf32>
    %74 = vector.shape_cast %73 : vector<1x8x8xf32> to vector<8x8xf32>
    %75 = vector.extract_strided_slice %70 {offsets = [2, 0, 0], sizes = [1, 8, 8], strides = [1, 1, 1]} : vector<4x8x8xf32> to vector<1x8x8xf32>
    %76 = vector.shape_cast %75 : vector<1x8x8xf32> to vector<8x8xf32>
    %77 = vector.extract_strided_slice %70 {offsets = [3, 0, 0], sizes = [1, 8, 8], strides = [1, 1, 1]} : vector<4x8x8xf32> to vector<1x8x8xf32>
    %78 = vector.shape_cast %77 : vector<1x8x8xf32> to vector<8x8xf32>
    %79 = tpu.concatenate %72, %74, %76, %78 in 1 : vector<8x8xf32>, vector<8x8xf32>, vector<8x8xf32>, vector<8x8xf32> -> vector<8x32xf32>
    %cst_28 = arith.constant dense<0.000000e+00> : vector<8x128xf32>
    %80 = tpu.matmul %79, %4, %cst_28 {dimension_numbers = #tpu.dot_dimension_numbers<[1], [0], [0], [1], [0, 0, 1, 1], [], []>} : vector<8x32xf32>, vector<32x128xf32>, vector<8x128xf32> -> vector<8x128xf32>
    %81 = vector.broadcast %11 : vector<1x128xf32> to vector<8x128xf32>
    %82 = arith.addf %80, %81 : vector<8x128xf32>
    %83 = arith.addf %82, %19 : vector<8x128xf32>
    %84 = tpu.iota {dimensions = array<i32: 1>} : vector<1x128xi32>
    %c32_i32 = arith.constant 32 : i32
    %85 = vector.broadcast %c32_i32 : i32 to vector<1x128xi32>
    %86 = arith.cmpi slt, %84, %85 : vector<1x128xi32>
    %87 = arith.extui %86 : vector<1x128xi1> to vector<1x128xi32>
    %88 = arith.sitofp %87 : vector<1x128xi32> to vector<1x128xf32>
    %cst_29 = arith.constant dense<0.000000e+00> : vector<8xf32>
    %89 = vector.multi_reduction <add>, %83, %cst_29 [1] : vector<8x128xf32> to vector<8xf32>
    %90 = vector.shape_cast %89 : vector<8xf32> to vector<8x1xf32>
    %cst_30 = arith.constant 3.125000e-02 : f32
    %91 = vector.broadcast %cst_30 : f32 to vector<8x1xf32>
    %92 = arith.mulf %90, %91 : vector<8x1xf32>
    %93 = vector.broadcast %92 : vector<8x1xf32> to vector<8x128xf32>
    %94 = arith.subf %83, %93 : vector<8x128xf32>
    %95 = vector.broadcast %88 : vector<1x128xf32> to vector<8x128xf32>
    %96 = arith.mulf %94, %95 : vector<8x128xf32>
    %97 = arith.mulf %96, %96 : vector<8x128xf32>
    %cst_31 = arith.constant dense<0.000000e+00> : vector<8xf32>
    %98 = vector.multi_reduction <add>, %97, %cst_31 [1] : vector<8x128xf32> to vector<8xf32>
    %99 = vector.shape_cast %98 : vector<8xf32> to vector<8x1xf32>
    %cst_32 = arith.constant 3.125000e-02 : f32
    %100 = vector.broadcast %cst_32 : f32 to vector<8x1xf32>
    %101 = arith.mulf %99, %100 : vector<8x1xf32>
    %cst_33 = arith.constant 9.99999974E-6 : f32
    %102 = vector.broadcast %cst_33 : f32 to vector<8x1xf32>
    %103 = arith.addf %101, %102 : vector<8x1xf32>
    %104 = math.rsqrt %103 : vector<8x1xf32>
    %105 = vector.broadcast %104 : vector<8x1xf32> to vector<8x128xf32>
    %106 = arith.mulf %96, %105 : vector<8x128xf32>
    %107 = vector.broadcast %14 : vector<1x128xf32> to vector<8x128xf32>
    %108 = arith.mulf %106, %107 : vector<8x128xf32>
    %109 = vector.broadcast %15 : vector<1x128xf32> to vector<8x128xf32>
    %110 = arith.addf %108, %109 : vector<8x128xf32>
    %cst_34 = arith.constant dense<0.000000e+00> : vector<8x128xf32>
    %111 = tpu.matmul %110, %5, %cst_34 {dimension_numbers = #tpu.dot_dimension_numbers<[1], [0], [0], [1], [0, 0, 1, 1], [], []>} : vector<8x128xf32>, vector<128x128xf32>, vector<8x128xf32> -> vector<8x128xf32>
    %112 = vector.broadcast %12 : vector<1x128xf32> to vector<8x128xf32>
    %113 = arith.addf %111, %112 : vector<8x128xf32>
    %cst_35 = arith.constant 5.000000e-01 : f32
    %114 = vector.broadcast %cst_35 : f32 to vector<8x128xf32>
    %115 = arith.mulf %114, %113 : vector<8x128xf32>
    %cst_36 = arith.constant 0.707106769 : f32
    %116 = vector.broadcast %cst_36 : f32 to vector<8x128xf32>
    %117 = arith.mulf %113, %116 : vector<8x128xf32>
    %118 = math.erf %117 : vector<8x128xf32>
    %cst_37 = arith.constant 1.000000e+00 : f32
    %119 = vector.broadcast %cst_37 : f32 to vector<8x128xf32>
    %120 = arith.addf %119, %118 : vector<8x128xf32>
    %121 = arith.mulf %115, %120 : vector<8x128xf32>
    %cst_38 = arith.constant dense<0.000000e+00> : vector<8x128xf32>
    %122 = tpu.matmul %121, %6, %cst_38 {dimension_numbers = #tpu.dot_dimension_numbers<[1], [0], [0], [1], [0, 0, 1, 1], [], []>} : vector<8x128xf32>, vector<128x128xf32>, vector<8x128xf32> -> vector<8x128xf32>
    %123 = vector.broadcast %13 : vector<1x128xf32> to vector<8x128xf32>
    %124 = arith.addf %122, %123 : vector<8x128xf32>
    %c0_39 = arith.constant 0 : index
    %c0_40 = arith.constant 0 : index
    %125 = vector.load %arg5[%c0_39, %c0_40] : memref<8x128xf32, #tpu.memory_space<vmem>>, vector<8x128xf32>
    tpu.vector_store %arg5[%c0_39, %c0_40], %124 {strides = array<i32>} : memref<8x128xf32, #tpu.memory_space<vmem>>, vector<8x128xf32>,
    return
  }
  func.func @transform_0(%arg0: i32) -> (i32, i32) {
    %c0_i32 = arith.constant 0 : i32
    %c0_i32_0 = arith.constant 0 : i32
    return %arg0, %c0_i32 : i32, i32
  }
  func.func @transform_1(%arg0: i32) -> (i32, i32) {
    %c0_i32 = arith.constant 0 : i32
    %c0_i32_0 = arith.constant 0 : i32
    return %arg0, %c0_i32 : i32, i32
  }
  func.func @transform_2(%arg0: i32) -> (i32, i32) {
    %c0_i32 = arith.constant 0 : i32
    %c0_i32_0 = arith.constant 0 : i32
    %c0_i32_1 = arith.constant 0 : i32
    return %c0_i32, %c0_i32_0 : i32, i32
  }
  func.func @transform_3(%arg0: i32) -> (i32, i32) {
    %c0_i32 = arith.constant 0 : i32
    %c0_i32_0 = arith.constant 0 : i32
    %c0_i32_1 = arith.constant 0 : i32
    return %c0_i32, %c0_i32_0 : i32, i32
  }
  func.func @transform_4(%arg0: i32) -> (i32, i32) {
    %c0_i32 = arith.constant 0 : i32
    %c0_i32_0 = arith.constant 0 : i32
    return %arg0, %c0_i32 : i32, i32
  }
}

module attributes {stable_mosaic.version = 11 : i64} {
  func.func @extended_phi_kernel(%arg0: i32, %arg1: memref<8x128xf32, #tpu.memory_space<vmem>>, %arg2: memref<8x128xf32, #tpu.memory_space<vmem>>, %arg3: memref<800x256xf32, #tpu.memory_space<vmem>>, %arg4: memref<9x256xf32, #tpu.memory_space<vmem>>, %arg5: memref<8x128xf32, #tpu.memory_space<vmem>>) attributes {dimension_semantics = [#tpu.dimension_semantics<parallel>], iteration_bounds = array<i64: 2>, scalar_prefetch = 0 : i64, scratch_operands = 0 : i64, tpu.core_type = #tpu.core_type<tc>, window_params = [{transform_indices = @transform_0, window_bounds = array<i64: 8, 128>}, {transform_indices = @transform_1, window_bounds = array<i64: 8, 128>}, {pipeline_mode = #tpu.pipeline_mode<synchronous>, transform_indices = @transform_2, window_bounds = array<i64: 800, 256>}, {pipeline_mode = #tpu.pipeline_mode<synchronous>, transform_indices = @transform_3, window_bounds = array<i64: 9, 256>}, {transform_indices = @transform_4, window_bounds = array<i64: 8, 128>}]} {
    %c0 = arith.constant 0 : index
    %c0_0 = arith.constant 0 : index
    %0 = vector.load %arg3[%c0, %c0_0] : memref<800x256xf32, #tpu.memory_space<vmem>>, vector<128x128xf32>
    %c128 = arith.constant 128 : index
    %c0_1 = arith.constant 0 : index
    %1 = vector.load %arg3[%c128, %c0_1] : memref<800x256xf32, #tpu.memory_space<vmem>>, vector<128x128xf32>
    %c256 = arith.constant 256 : index
    %c0_2 = arith.constant 0 : index
    %2 = vector.load %arg3[%c256, %c0_2] : memref<800x256xf32, #tpu.memory_space<vmem>>, vector<128x128xf32>
    %c384 = arith.constant 384 : index
    %c0_3 = arith.constant 0 : index
    %3 = vector.load %arg3[%c384, %c0_3] : memref<800x256xf32, #tpu.memory_space<vmem>>, vector<128x256xf32>
    %c512 = arith.constant 512 : index
    %c0_4 = arith.constant 0 : index
    %4 = vector.load %arg3[%c512, %c0_4] : memref<800x256xf32, #tpu.memory_space<vmem>>, vector<32x128xf32>
    %c544 = arith.constant 544 : index
    %c0_5 = arith.constant 0 : index
    %5 = vector.load %arg3[%c544, %c0_5] : memref<800x256xf32, #tpu.memory_space<vmem>>, vector<128x128xf32>
    %c672 = arith.constant 672 : index
    %c0_6 = arith.constant 0 : index
    %6 = vector.load %arg3[%c672, %c0_6] : memref<800x256xf32, #tpu.memory_space<vmem>>, vector<128x128xf32>
    %c0_7 = arith.constant 0 : index
    %c0_8 = arith.constant 0 : index
    %7 = vector.load %arg4[%c0_7, %c0_8] : memref<9x256xf32, #tpu.memory_space<vmem>>, vector<1x128xf32>
    %c1 = arith.constant 1 : index
    %c0_9 = arith.constant 0 : index
    %8 = vector.load %arg4[%c1, %c0_9] : memref<9x256xf32, #tpu.memory_space<vmem>>, vector<1x128xf32>
    %c2 = arith.constant 2 : index
    %c0_10 = arith.constant 0 : index
    %9 = vector.load %arg4[%c2, %c0_10] : memref<9x256xf32, #tpu.memory_space<vmem>>, vector<1x128xf32>
    %c3 = arith.constant 3 : index
    %c0_11 = arith.constant 0 : index
    %10 = vector.load %arg4[%c3, %c0_11] : memref<9x256xf32, #tpu.memory_space<vmem>>, vector<1x256xf32>
    %c4 = arith.constant 4 : index
    %c0_12 = arith.constant 0 : index
    %11 = vector.load %arg4[%c4, %c0_12] : memref<9x256xf32, #tpu.memory_space<vmem>>, vector<1x128xf32>
    %c5 = arith.constant 5 : index
    %c0_13 = arith.constant 0 : index
    %12 = vector.load %arg4[%c5, %c0_13] : memref<9x256xf32, #tpu.memory_space<vmem>>, vector<1x128xf32>
    %c6 = arith.constant 6 : index
    %c0_14 = arith.constant 0 : index
    %13 = vector.load %arg4[%c6, %c0_14] : memref<9x256xf32, #tpu.memory_space<vmem>>, vector<1x128xf32>
    %c7 = arith.constant 7 : index
    %c0_15 = arith.constant 0 : index
    %14 = vector.load %arg4[%c7, %c0_15] : memref<9x256xf32, #tpu.memory_space<vmem>>, vector<1x128xf32>
    %c8 = arith.constant 8 : index
    %c0_16 = arith.constant 0 : index
    %15 = vector.load %arg4[%c8, %c0_16] : memref<9x256xf32, #tpu.memory_space<vmem>>, vector<1x128xf32>
    %c0_17 = arith.constant 0 : index
    %c0_18 = arith.constant 0 : index
    %16 = vector.load %arg1[%c0_17, %c0_18] : memref<8x128xf32, #tpu.memory_space<vmem>>, vector<8x128xf32>
    %cst = arith.constant dense<0.000000e+00> : vector<8x128xf32>
    %17 = tpu.matmul %16, %0, %cst {dimension_numbers = #tpu.dot_dimension_numbers<[1], [0], [0], [1], [0, 0, 1, 1], [], []>} : vector<8x128xf32>, vector<128x128xf32>, vector<8x128xf32> -> vector<8x128xf32>
    %18 = vector.broadcast %7 : vector<1x128xf32> to vector<8x128xf32>
    %19 = arith.addf %17, %18 : vector<8x128xf32>
    %c0_19 = arith.constant 0 : index
    %c0_20 = arith.constant 0 : index
    %20 = vector.load %arg2[%c0_19, %c0_20] : memref<8x128xf32, #tpu.memory_space<vmem>>, vector<8x128xf32>
    %cst_21 = arith.constant dense<0.000000e+00> : vector<8x128xf32>
    %21 = tpu.matmul %20, %1, %cst_21 {dimension_numbers = #tpu.dot_dimension_numbers<[1], [0], [0], [1], [0, 0, 1, 1], [], []>} : vector<8x128xf32>, vector<128x128xf32>, vector<8x128xf32> -> vector<8x128xf32>
    %22 = vector.broadcast %8 : vector<1x128xf32> to vector<8x128xf32>
    %23 = arith.addf %21, %22 : vector<8x128xf32>
    %cst_22 = arith.constant dense<0.000000e+00> : vector<8x128xf32>
    %24 = tpu.matmul %19, %2, %cst_22 {dimension_numbers = #tpu.dot_dimension_numbers<[1], [0], [0], [1], [0, 0, 1, 1], [], []>} : vector<8x128xf32>, vector<128x128xf32>, vector<8x128xf32> -> vector<8x128xf32>
    %25 = vector.broadcast %9 : vector<1x128xf32> to vector<8x128xf32>
    %26 = arith.addf %24, %25 : vector<8x128xf32>
    %cst_23 = arith.constant dense<0.000000e+00> : vector<8x256xf32>
    %27 = tpu.matmul %23, %3, %cst_23 {dimension_numbers = #tpu.dot_dimension_numbers<[1], [0], [0], [1], [0, 0, 1, 1], [], []>} : vector<8x128xf32>, vector<128x256xf32>, vector<8x256xf32> -> vector<8x256xf32>
    %28 = vector.broadcast %10 : vector<1x256xf32> to vector<8x256xf32>
    %29 = arith.addf %27, %28 : vector<8x256xf32>
    %30 = vector.extract_strided_slice %29 {offsets = [0, 0], sizes = [8, 128], strides = [1, 1]} : vector<8x256xf32> to vector<8x128xf32>
    %31 = vector.extract_strided_slice %29 {offsets = [0, 128], sizes = [8, 128], strides = [1, 1]} : vector<8x256xf32> to vector<8x128xf32>
    %32 = vector.extract_strided_slice %26 {offsets = [0, 0], sizes = [8, 8], strides = [1, 1]} : vector<8x128xf32> to vector<8x8xf32>
    %33 = vector.extract_strided_slice %26 {offsets = [0, 8], sizes = [8, 8], strides = [1, 1]} : vector<8x128xf32> to vector<8x8xf32>
    %34 = vector.extract_strided_slice %26 {offsets = [0, 16], sizes = [8, 8], strides = [1, 1]} : vector<8x128xf32> to vector<8x8xf32>
    %35 = vector.extract_strided_slice %26 {offsets = [0, 24], sizes = [8, 8], strides = [1, 1]} : vector<8x128xf32> to vector<8x8xf32>
    %36 = vector.shape_cast %32 : vector<8x8xf32> to vector<1x8x8xf32>
    %37 = vector.shape_cast %33 : vector<8x8xf32> to vector<1x8x8xf32>
    %38 = vector.shape_cast %34 : vector<8x8xf32> to vector<1x8x8xf32>
    %39 = vector.shape_cast %35 : vector<8x8xf32> to vector<1x8x8xf32>
    %40 = tpu.concatenate %36, %37, %38, %39 in 0 : vector<1x8x8xf32>, vector<1x8x8xf32>, vector<1x8x8xf32>, vector<1x8x8xf32> -> vector<4x8x8xf32>
    %41 = vector.extract_strided_slice %30 {offsets = [0, 0], sizes = [8, 8], strides = [1, 1]} : vector<8x128xf32> to vector<8x8xf32>
    %42 = vector.extract_strided_slice %30 {offsets = [0, 8], sizes = [8, 8], strides = [1, 1]} : vector<8x128xf32> to vector<8x8xf32>
    %43 = vector.extract_strided_slice %30 {offsets = [0, 16], sizes = [8, 8], strides = [1, 1]} : vector<8x128xf32> to vector<8x8xf32>
    %44 = vector.extract_strided_slice %30 {offsets = [0, 24], sizes = [8, 8], strides = [1, 1]} : vector<8x128xf32> to vector<8x8xf32>
    %45 = vector.shape_cast %41 : vector<8x8xf32> to vector<1x8x8xf32>
    %46 = vector.shape_cast %42 : vector<8x8xf32> to vector<1x8x8xf32>
    %47 = vector.shape_cast %43 : vector<8x8xf32> to vector<1x8x8xf32>
    %48 = vector.shape_cast %44 : vector<8x8xf32> to vector<1x8x8xf32>
    %49 = tpu.concatenate %45, %46, %47, %48 in 0 : vector<1x8x8xf32>, vector<1x8x8xf32>, vector<1x8x8xf32>, vector<1x8x8xf32> -> vector<4x8x8xf32>
    %50 = vector.extract_strided_slice %31 {offsets = [0, 0], sizes = [8, 8], strides = [1, 1]} : vector<8x128xf32> to vector<8x8xf32>
    %51 = vector.extract_strided_slice %31 {offsets = [0, 8], sizes = [8, 8], strides = [1, 1]} : vector<8x128xf32> to vector<8x8xf32>
    %52 = vector.extract_strided_slice %31 {offsets = [0, 16], sizes = [8, 8], strides = [1, 1]} : vector<8x128xf32> to vector<8x8xf32>
    %53 = vector.extract_strided_slice %31 {offsets = [0, 24], sizes = [8, 8], strides = [1, 1]} : vector<8x128xf32> to vector<8x8xf32>
    %54 = vector.shape_cast %50 : vector<8x8xf32> to vector<1x8x8xf32>
    %55 = vector.shape_cast %51 : vector<8x8xf32> to vector<1x8x8xf32>
    %56 = vector.shape_cast %52 : vector<8x8xf32> to vector<1x8x8xf32>
    %57 = vector.shape_cast %53 : vector<8x8xf32> to vector<1x8x8xf32>
    %58 = tpu.concatenate %54, %55, %56, %57 in 0 : vector<1x8x8xf32>, vector<1x8x8xf32>, vector<1x8x8xf32>, vector<1x8x8xf32> -> vector<4x8x8xf32>
    "tpu.trace_start"() <{level = 10 : i32, message = "zqd,zkd->zqk"}> : () -> ()
    %cst_24 = arith.constant dense<0.000000e+00> : vector<4x8x8xf32>
    %59 = tpu.matmul %40, %49, %cst_24 {dimension_numbers = #tpu.dot_dimension_numbers<[2], [2], [1], [1], [0, 0, 0, 1, 1, 1], [0], [0]>} : vector<4x8x8xf32>, vector<4x8x8xf32>, vector<4x8x8xf32> -> vector<4x8x8xf32>
    "tpu.trace_stop"() : () -> ()
    %cst_25 = arith.constant dense<0xFF800000> : vector<4x8xf32>
    %60 = vector.multi_reduction <maximumf>, %59, %cst_25 [2] : vector<4x8x8xf32> to vector<4x8xf32>
    %61 = vector.shape_cast %60 : vector<4x8xf32> to vector<4x8x1xf32>
    %62 = vector.broadcast %61 : vector<4x8x1xf32> to vector<4x8x8xf32>
    %63 = arith.subf %59, %62 : vector<4x8x8xf32>
    %64 = math.exp %63 : vector<4x8x8xf32>
    %cst_26 = arith.constant dense<0.000000e+00> : vector<4x8xf32>
    %65 = vector.multi_reduction <add>, %64, %cst_26 [2] : vector<4x8x8xf32> to vector<4x8xf32>
    %66 = vector.shape_cast %65 : vector<4x8xf32> to vector<4x8x1xf32>
    %67 = tpu.reciprocal %66 : vector<4x8x1xf32> -> vector<4x8x1xf32>
    %68 = vector.broadcast %67 : vector<4x8x1xf32> to vector<4x8x8xf32>
    %69 = arith.mulf %64, %68 : vector<4x8x8xf32>
    "tpu.trace_start"() <{level = 10 : i32, message = "zqk,zkd->zqd"}> : () -> ()
    %cst_27 = arith.constant dense<0.000000e+00> : vector<4x8x8xf32>
    %70 = tpu.matmul %69, %58, %cst_27 {dimension_numbers = #tpu.dot_dimension_numbers<[2], [1], [1], [2], [0, 0, 0, 1, 1, 2], [0], [0]>} : vector<4x8x8xf32>, vector<4x8x8xf32>, vector<4x8x8xf32> -> vector<4x8x8xf32>
    "tpu.trace_stop"() : () -> ()
    %71 = vector.extract_strided_slice %70 {offsets = [0, 0, 0], sizes = [1, 8, 8], strides = [1, 1, 1]} : vector<4x8x8xf32> to vector<1x8x8xf32>
    %72 = vector.shape_cast %71 : vector<1x8x8xf32> to vector<8x8xf32>
    %73 = vector.extract_strided_slice %70 {offsets = [1, 0, 0], sizes = [1, 8, 8], strides = [1, 1, 1]} : vector<4x8x8xf32> to vector<1x8x8xf32>
    %74 = vector.shape_cast %73 : vector<1x8x8xf32> to vector<8x8xf32>
    %75 = vector.extract_strided_slice %70 {offsets = [2, 0, 0], sizes = [1, 8, 8], strides = [1, 1, 1]} : vector<4x8x8xf32> to vector<1x8x8xf32>
    %76 = vector.shape_cast %75 : vector<1x8x8xf32> to vector<8x8xf32>
    %77 = vector.extract_strided_slice %70 {offsets = [3, 0, 0], sizes = [1, 8, 8], strides = [1, 1, 1]} : vector<4x8x8xf32> to vector<1x8x8xf32>
    %78 = vector.shape_cast %77 : vector<1x8x8xf32> to vector<8x8xf32>
    %79 = tpu.concatenate %72, %74, %76, %78 in 1 : vector<8x8xf32>, vector<8x8xf32>, vector<8x8xf32>, vector<8x8xf32> -> vector<8x32xf32>
    %cst_28 = arith.constant dense<0.000000e+00> : vector<8x128xf32>
    %80 = tpu.matmul %79, %4, %cst_28 {dimension_numbers = #tpu.dot_dimension_numbers<[1], [0], [0], [1], [0, 0, 1, 1], [], []>} : vector<8x32xf32>, vector<32x128xf32>, vector<8x128xf32> -> vector<8x128xf32>
    %81 = vector.broadcast %11 : vector<1x128xf32> to vector<8x128xf32>
    %82 = arith.addf %80, %81 : vector<8x128xf32>
    %83 = arith.addf %82, %19 : vector<8x128xf32>
    %84 = tpu.iota {dimensions = array<i32: 1>} : vector<1x128xi32>
    %c32_i32 = arith.constant 32 : i32
    %85 = vector.broadcast %c32_i32 : i32 to vector<1x128xi32>
    %86 = arith.cmpi slt, %84, %85 : vector<1x128xi32>
    %87 = arith.extui %86 : vector<1x128xi1> to vector<1x128xi32>
    %88 = arith.sitofp %87 : vector<1x128xi32> to vector<1x128xf32>
    %cst_29 = arith.constant dense<0.000000e+00> : vector<8xf32>
    %89 = vector.multi_reduction <add>, %83, %cst_29 [1] : vector<8x128xf32> to vector<8xf32>
    %90 = vector.shape_cast %89 : vector<8xf32> to vector<8x1xf32>
    %cst_30 = arith.constant 3.125000e-02 : f32
    %91 = vector.broadcast %cst_30 : f32 to vector<8x1xf32>
    %92 = arith.mulf %90, %91 : vector<8x1xf32>
    %93 = vector.broadcast %92 : vector<8x1xf32> to vector<8x128xf32>
    %94 = arith.subf %83, %93 : vector<8x128xf32>
    %95 = vector.broadcast %88 : vector<1x128xf32> to vector<8x128xf32>
    %96 = arith.mulf %94, %95 : vector<8x128xf32>
    %97 = arith.mulf %96, %96 : vector<8x128xf32>
    %cst_31 = arith.constant dense<0.000000e+00> : vector<8xf32>
    %98 = vector.multi_reduction <add>, %97, %cst_31 [1] : vector<8x128xf32> to vector<8xf32>
    %99 = vector.shape_cast %98 : vector<8xf32> to vector<8x1xf32>
    %cst_32 = arith.constant 3.125000e-02 : f32
    %100 = vector.broadcast %cst_32 : f32 to vector<8x1xf32>
    %101 = arith.mulf %99, %100 : vector<8x1xf32>
    %cst_33 = arith.constant 9.99999974E-6 : f32
    %102 = vector.broadcast %cst_33 : f32 to vector<8x1xf32>
    %103 = arith.addf %101, %102 : vector<8x1xf32>
    %104 = math.rsqrt %103 : vector<8x1xf32>
    %105 = vector.broadcast %104 : vector<8x1xf32> to vector<8x128xf32>
    %106 = arith.mulf %96, %105 : vector<8x128xf32>
    %107 = vector.broadcast %14 : vector<1x128xf32> to vector<8x128xf32>
    %108 = arith.mulf %106, %107 : vector<8x128xf32>
    %109 = vector.broadcast %15 : vector<1x128xf32> to vector<8x128xf32>
    %110 = arith.addf %108, %109 : vector<8x128xf32>
    %cst_34 = arith.constant dense<0.000000e+00> : vector<8x128xf32>
    %111 = tpu.matmul %110, %5, %cst_34 {dimension_numbers = #tpu.dot_dimension_numbers<[1], [0], [0], [1], [0, 0, 1, 1], [], []>} : vector<8x128xf32>, vector<128x128xf32>, vector<8x128xf32> -> vector<8x128xf32>
    %112 = vector.broadcast %12 : vector<1x128xf32> to vector<8x128xf32>
    %113 = arith.addf %111, %112 : vector<8x128xf32>
    %cst_35 = arith.constant 5.000000e-01 : f32
    %114 = vector.broadcast %cst_35 : f32 to vector<8x128xf32>
    %115 = arith.mulf %114, %113 : vector<8x128xf32>
    %cst_36 = arith.constant 0.707106769 : f32
    %116 = vector.broadcast %cst_36 : f32 to vector<8x128xf32>
    %117 = arith.mulf %113, %116 : vector<8x128xf32>
    %118 = math.erf %117 : vector<8x128xf32>
    %cst_37 = arith.constant 1.000000e+00 : f32
    %119 = vector.broadcast %cst_37 : f32 to vector<8x128xf32>
    %120 = arith.addf %119, %118 : vector<8x128xf32>
    %121 = arith.mulf %115, %120 : vector<8x128xf32>
    %cst_38 = arith.constant dense<0.000000e+00> : vector<8x128xf32>
    %122 = tpu.matmul %121, %6, %cst_38 {dimension_numbers = #tpu.dot_dimension_numbers<[1], [0], [0], [1], [0, 0, 1, 1], [], []>} : vector<8x128xf32>, vector<128x128xf32>, vector<8x128xf32> -> vector<8x128xf32>
    %123 = vector.broadcast %13 : vector<1x128xf32> to vector<8x128xf32>
    %124 = arith.addf %122, %123 : vector<8x128xf32>
    %c0_39 = arith.constant 0 : index
    %c0_40 = arith.constant 0 : index
    %125 = vector.load %arg5[%c0_39, %c0_40] : memref<8x128xf32, #tpu.memory_space<vmem>>, vector<8x128xf32>
    tpu.vector_store %arg5[%c0_39, %c0_40], %124 {strides = array<i32>} : memref<8x128xf32, #tpu.memory_space<vmem>>, vector<8x128xf32>,
    return
  }
  func.func @transform_0(%arg0: i32) -> (i32, i32) {
    %c0_i32 = arith.constant 0 : i32
    %c0_i32_0 = arith.constant 0 : i32
    return %arg0, %c0_i32 : i32, i32
  }
  func.func @transform_1(%arg0: i32) -> (i32, i32) {
    %c0_i32 = arith.constant 0 : i32
    %c0_i32_0 = arith.constant 0 : i32
    return %arg0, %c0_i32 : i32, i32
  }
  func.func @transform_2(%arg0: i32) -> (i32, i32) {
    %c0_i32 = arith.constant 0 : i32
    %c0_i32_0 = arith.constant 0 : i32
    %c0_i32_1 = arith.constant 0 : i32
    return %c0_i32, %c0_i32_0 : i32, i32
  }
  func.func @transform_3(%arg0: i32) -> (i32, i32) {
    %c0_i32 = arith.constant 0 : i32
    %c0_i32_0 = arith.constant 0 : i32
    %c0_i32_1 = arith.constant 0 : i32
    return %c0_i32, %c0_i32_0 : i32, i32
  }
  func.func @transform_4(%arg0: i32) -> (i32, i32) {
    %c0_i32 = arith.constant 0 : i32
    %c0_i32_0 = arith.constant 0 : i32
    return %arg0, %c0_i32 : i32, i32
  }
}

</mosaic_0001>

<bundles_post_ra>
// kernel: tpu_custom_call.1
= control target key start
LH: loop header
LB: loop body
LE: loop exit
PB: predicated region body
PF: predicated region fallthrough
CT: control target
= control target key end

     0   :  { %s2996_s0 = inlined_call_operand.hbm [shape: f32[16,128], index: 0, kind: input, shape index: {}]   ;;  %s2997_s1 = inlined_call_operand.hbm [shape: f32[16,128], index: 1, kind: input, shape index: {}]   ;;  %s2998_s2 = inlined_call_operand.hbm [shape: f32[800,256], index: 2, kind: input, shape index: {}]   ;;  %s2999_s3 = inlined_call_operand.hbm [shape: f32[9,256], index: 3, kind: input, shape index: {}]   ;;  %s3000_s4 = inlined_call_operand.hbm [shape: f32[16,128], index: 4, kind: output, shape index: {}]  }
   0x1   :  { %3005 = sst [smem:[#allocation16_spill]] %s2998_s2 }
   0x2   :  { %9 = vsyncpa [#allocation3], 0 }
   0x3   :  { %11 = vsyncpa [#allocation3 + $0x1], 0 }
   0x4   :  { %12 = vsyncpa [#allocation6], 0 }
   0x5   :  { %14 = vsyncpa [#allocation6 + $0x1], 0 }
   0x6   :  { %15 = vsyncpa [#allocation9], 0 }
   0x7   :  { %16 = vsyncpa [#allocation4], 0 }
   0x8   :  { %18 = vsyncpa [#allocation4 + $0x1], 0  ;;  %s2602_s15 = smov 0   ;;  %s2604_s16 = smov 0  }
   0x9   :  { %s2606_s17 = smov 0   ;;  %s2608_s18 = smov 0  }
   0xa LB: > { %s2623_s19 = sadd.s32 4294967295, %s2559_s18   ;;  %s1739_s20 = sadd.s32 4294967294, %s2559_s18   ;;  %s2559_s18 = sphi %s2608_s18, %s3026_s18   ;;  %s2555_s17 = sphi %s2606_s17, %s3025_s17   ;;  %s2551_s16 = sphi %s2604_s16, %s3024_s16   ;;  %s2547_s15 = sphi %s2602_s15, %s3023_s15  }
   0xb   : > { %p44_p0 = scmp.ne.s32.totalorder %s2551_s16, %s2547_s15  ;;  %p3001_p1 = scmp.eq.s32.totalorder %s2623_s19, 0 }
   0xc   : > { %p142_p3 = scmp.eq.s32.totalorder %s1739_s20, 1  ;;  %p1740_p5 = scmp.ge.s32.totalorder %s2559_s18, 1 }
   0xd   : > { %p2632_p4 = por %p3001_p1, %p44_p0  ;;  %p149_p7 = scmp.lt.s32.totalorder %s2559_s18, 3 }
   0xe   : > { %p2637_p6 = por %p142_p3, %p44_p0  ;;  %s2561_s24 = smov [#allocation7]  }
   0xf   : > { %s3006_s21 = scalar_select %p2632_p4, 1, 0 }
  0x10   : > { %s3007_s22 = scalar_select %p2637_p6, 1, 0 }
  0x11   : > { %p2642_p8 = pnand %p1740_p5, %p149_p7  ;;  %s161_s25 = sshll.u32 %s2561_s24, 4  ;;  %s2646_s25 = int_to_ptr.vmem [resolvable:$true] %s161_s25 }
  0x12   : > { %s2562_s27 = smov [#allocation8]   ;;  %s3010_s2 = sld [smem:[#allocation16_spill]] }
  0x13   : > { %s3008_s23 = scalar_select %p2642_p8, 1, 0 }
  0x14   : > { %p2276_p9 = pneg %p2642_p8  ;;  %s174_s28 = sshll.u32 %s2562_s27, 4  ;;  %s2657_s28 = int_to_ptr.vmem [resolvable:$true] %s174_s28 }
  0x16   : > { %p2653_p11 = pnand %p2276_p9, %p3001_p1 }
  0x18   : > { %s2365_s5 = scalar_lea.hbm %s3010_s2, 25600  ;;  %p2367_p13 = pneg %p2653_p11 }
  0x19   : > { %p2366_p12 = scmp.ne.s32.totalorder %s3010_s2, %s2365_s5  ;;  %p2372_p5 = scmp.lt.u32.totalorder %s2365_s5, %s3010_s2 }
  0x1b   : > { %p2368_p0 = pnand %p2367_p13, %p2366_p12 }
  0x1d   : > { %p2369_p3 = pneg %p2368_p0 }
  0x1f   : > { %p2374_p7 = pnand %p2372_p5, %p2369_p3 }
  0x21   : > { %2377 = shalt.err (!%p2374_p7)
}
  0x22   : > { %s2378_s10 = scalar_lea.vmem %s2646_s25, 25600  ;;  %p2386_p2 = scmp.lt.s32.totalorder %s2646_s25, %s2646_s25 }
  0x23   : > { %p2379_p9 = scmp.ne.s32.totalorder %s2646_s25, %s2378_s10  ;;  %p2387_p12 = scmp.lt.s32.totalorder %s2378_s10, %s2378_s10 }
  0x25   : > { %p2381_p10 = pnand %p2379_p9, %p2367_p13  ;;  %p2388_p0 = por %p2387_p12, %p2386_p2 }
  0x27   : > { %p2382_p1 = pneg %p2381_p10 }
  0x29   : > { %p2389_p6 = pnand %p2388_p0, %p2382_p1 }
  0x2b   : > { %2392 = shalt.err (!%p2389_p6)
}
  0x2c   : > { %s2563_s11 = smov 256   ;;  %s2564_s12 = smov 16  }
  0x2d   : > { %2279 = dma.hbm_to_vmem [thread:$0]  (!%p2653_p11), %s3010_s2, 25600, %s2646_s25, [#allocation6], %s2563_s11, %s2563_s11, %s2564_s12  }
  0x2e   : > { %s2393_s27 = scalar_lea.hbm %s2999_s3, 512 }
  0x2f   : > { %p2394_p2 = scmp.ne.s32.totalorder %s2999_s3, %s2393_s27  ;;  %p2400_p10 = scmp.lt.u32.totalorder %s2393_s27, %s2999_s3 }
  0x31   : > { %p2396_p1 = pnand %p2394_p2, %p2367_p13 }
  0x33   : > { %p2397_p6 = pneg %p2396_p1 }
  0x35   : > { %p2402_p3 = pnand %p2400_p10, %p2397_p6 }
  0x37   : > { %2405 = shalt.err (!%p2402_p3)
}
  0x38   : > { %s2406_s25 = scalar_lea.vmem %s2657_s28, 512  ;;  %p2414_p12 = scmp.lt.s32.totalorder %s2657_s28, %s2657_s28 }
  0x39   : > { %p2407_p5 = scmp.ne.s32.totalorder %s2657_s28, %s2406_s25  ;;  %p2415_p0 = scmp.lt.s32.totalorder %s2406_s25, %s2406_s25 }
  0x3b   : > { %p2409_p7 = pnand %p2407_p5, %p2367_p13  ;;  %p2416_p2 = por %p2415_p0, %p2414_p12 }
  0x3d   : > { %p2410_p9 = pneg %p2409_p7 }
  0x3f   : > { %p2417_p1 = pnand %p2416_p2, %p2410_p9 }
  0x41   : > { %2420 = shalt.err (!%p2417_p1)
}
  0x42   : > { %2282 = dma.hbm_to_vmem [thread:$0]  (!%p2653_p11), %s2999_s3, 512, %s2657_s28, [#allocation9], %s2563_s11, %s2563_s11, %s2564_s12  }
  0x43   : > { %s2712_s9 = sadd.s32 1, %s2559_s18   ;;  %s31_s26 = sadd.s32 1, %s2555_s17 }
  0x44   : > { %s28_s10 = ssub.s32 %s2559_s18, %s2712_s9  ;;  %p38_p13 = scmp.ne.s32.totalorder %s2555_s17, %s2551_s16 }
  0x45   : > { %p29_p6 = scmp.eq.s32.totalorder %s28_s10, 0  ;;  %p39_p10 = scmp.eq.s32.totalorder %s2559_s18, 0 }
  0x46   : > { %p3011_p3 = scmp.eq.s32.totalorder %s2623_s19, 1  ;;  %p2296_p7 = scmp.lt.s32.totalorder %s2559_s18, 2 }
  0x47   : > { %s2728_s14 = scalar_select %p29_p6, %s2555_s17, %s31_s26  }
  0x48   : > { %p2722_p5 = por %p3011_p3, %p38_p13  ;;  %p40_p9 = por %p39_p10, %p38_p13 }
  0x49   : > { %s188_s20 = sand.u32 1, %s2555_s17   ;;  %s1745_s11 = sshll.u32 %s2559_s18, 7 }
  0x4a   : > { %s3012_s13 = scalar_select %p2722_p5, 1, 0 }
  0x4b   : > { %s2731_s28 = sshll.u32 %s188_s20, 3  ;;  %s2737_s27 = scalar_lea.hbm %s2996_s0, %s1745_s11 }
  0x4c   : > { %s192_s29 = scalar_lea.vmem [#allocation2], %s2731_s28  ;;  %p2742_p11 = pnand %p2296_p7, %p40_p9 }
  0x4d   : > { %s199_s30 = sshll.u32 %s192_s29, 4  ;;  %s2749_s7 = scalar_lea.hbm %s2997_s1, %s1745_s11  ;;  %s2740_s30 = int_to_ptr.vmem [resolvable:$true] %s199_s30 }
  0x4e   : > { %s206_s8 = sand.u32 1, %s2559_s18   ;;  %s189_s26 = scalar_lea.sflag [#allocation3], %s188_s20 }
  0x4f   : > { %s2421_s10 = scalar_lea.hbm %s2737_s27, 128  ;;  %p2423_p0 = pneg %p2742_p11 }
  0x50   : > { %p2422_p12 = scmp.ne.s32.totalorder %s2737_s27, %s2421_s10  ;;  %s2426_s29 = scalar_lea.hbm %s2996_s0, 256 }
  0x51   : > { %p2427_p13 = scmp.lt.u32.totalorder %s2737_s27, %s2996_s0  ;;  %p2428_p6 = scmp.lt.u32.totalorder %s2426_s29, %s2421_s10 }
  0x52   : > { %p2424_p2 = pnand %p2423_p0, %p2422_p12  ;;  %p2430_p3 = scmp.lt.u32.totalorder %s2421_s10, %s2737_s27 }
  0x53   : > { %p2429_p10 = por %p2428_p6, %p2427_p13 }
  0x54   : > { %p2425_p1 = pneg %p2424_p2 }
  0x55   : > { %p2431_p7 = por %p2430_p3, %p2429_p10 }
  0x57   : > { %p2432_p9 = pnand %p2431_p7, %p2425_p1 }
  0x59   : > { %2435 = shalt.err (!%p2432_p9)
}
  0x5a   : > { %s2436_s20 = scalar_lea.vmem %s2740_s30, 128  ;;  %s2565_s11 = smov [#allocation2]  }
  0x5b   : > { %p2437_p12 = scmp.ne.s32.totalorder %s2740_s30, %s2436_s20  ;;  %s2441_s25 = sshll.u32 %s2565_s11, 4  ;;  %s2442_s25 = int_to_ptr.vmem [resolvable:$false] %s2441_s25 }
  0x5c   : > { %s2443_s2 = scalar_lea.vmem %s2442_s25, 256  ;;  %p2444_p4 = scmp.lt.s32.totalorder %s2740_s30, %s2442_s25 }
  0x5d   : > { %p2439_p2 = pnand %p2437_p12, %p2423_p0  ;;  %p2445_p13 = scmp.lt.s32.totalorder %s2443_s2, %s2436_s20 }
  0x5f   : > { %p2440_p5 = pneg %p2439_p2  ;;  %p2446_p6 = por %p2445_p13, %p2444_p4 }
  0x61   : > { %p2447_p10 = pnand %p2446_p6, %p2440_p5 }
  0x63   : > { %2450 = shalt.err (!%p2447_p10)
}
  0x64   : > { %2286 = dma.hbm_to_vmem [thread:$0]  (!%p2742_p11), %s2737_s27, 128, %s2740_s30, %s189_s26  }
  0x65   : > { %s210_s10 = scalar_lea.vmem [#allocation5], %s2731_s28  ;;  %s207_s24 = scalar_lea.sflag [#allocation6], %s206_s8 }
  0x66   : > { %s217_s12 = sshll.u32 %s210_s10, 4  ;;  %s2451_s29 = scalar_lea.hbm %s2749_s7, 128  ;;  %s218_s12 = int_to_ptr.vmem [resolvable:$true] %s217_s12 }
  0x67   : > { %p2452_p4 = scmp.ne.s32.totalorder %s2749_s7, %s2451_s29  ;;  %s2456_s11 = scalar_lea.hbm %s2997_s1, 256 }
  0x68   : > { %p2457_p3 = scmp.lt.u32.totalorder %s2749_s7, %s2997_s1  ;;  %p2458_p7 = scmp.lt.u32.totalorder %s2456_s11, %s2451_s29 }
  0x69   : > { %p2454_p5 = pnand %p2452_p4, %p2423_p0  ;;  %p2460_p12 = scmp.lt.u32.totalorder %s2451_s29, %s2749_s7 }
  0x6a   : > { %p2459_p9 = por %p2458_p7, %p2457_p3 }
  0x6b   : > { %p2455_p1 = pneg %p2454_p5 }
  0x6c   : > { %p2461_p2 = por %p2460_p12, %p2459_p9 }
  0x6e   : > { %p2462_p13 = pnand %p2461_p2, %p2455_p1 }
  0x70   : > { %2465 = shalt.err (!%p2462_p13)
}
  0x71   : > { %s2466_s28 = scalar_lea.vmem %s218_s12, 128  ;;  %s2566_s27 = smov [#allocation5]  }
  0x72   : > { %p2467_p6 = scmp.ne.s32.totalorder %s218_s12, %s2466_s28  ;;  %s2471_s30 = sshll.u32 %s2566_s27, 4  ;;  %s2472_s30 = int_to_ptr.vmem [resolvable:$false] %s2471_s30 }
  0x73   : > { %s2473_s8 = scalar_lea.vmem %s2472_s30, 256  ;;  %p2474_p5 = scmp.lt.s32.totalorder %s218_s12, %s2472_s30 }
  0x74   : > { %p2469_p10 = pnand %p2467_p6, %p2423_p0  ;;  %p2475_p8 = scmp.lt.s32.totalorder %s2473_s8, %s2466_s28 }
  0x76   : > { %p2470_p4 = pneg %p2469_p10  ;;  %p2476_p3 = por %p2475_p8, %p2474_p5 }
  0x78   : > { %p2477_p7 = pnand %p2476_p3, %p2470_p4 }
  0x7a   : > { %2480 = shalt.err (!%p2477_p7)
}
  0x7b   : > { %2289 = dma.hbm_to_vmem [thread:$0]  (!%p2742_p11), %s2749_s7, 128, %s218_s12, %s207_s24  }
  0x7c   : > { %p3014_p1 = scmp.ne.s32.totalorder %s3008_s23, 0 }
  0x7d   : > { %s2802_s26 = sand.u32 (!%p3014_p1), 1, %s2551_s16   ;;  %p3015_p8 = scmp.ne.s32.totalorder (!%p3014_p1), %s3006_s21, 0 }
  0x7e   : > { %226 = sbr.rel (%p3014_p1) target bundleno = 2577 (0xa11), region = 36  ;;  %s2805_s10 = sshll.u32 (!%p3014_p1), %s2802_s26, 3 }
  0x7f   : > { %s229_s29 = scalar_lea.sflag (!%p3014_p1), [#allocation3], %s2802_s26  ;;  %s232_s6 = scalar_lea.vmem (!%p3014_p1), [#allocation2], %s2805_s10 }
  0x85   : > { %2526 = dma.done.wait (%p3015_p8), %s229_s29, 128  }
  0x86   : > { %2528 = vsyncadd (%p3015_p8), %s229_s29, 4294967168  ;;  %s237_s23 = sand.u32 1, %s2623_s19   ;;  %s241_s7 = scalar_lea.vmem [#allocation5], %s2805_s10 }
  0x87   : > { %s238_s5 = scalar_lea.sflag [#allocation6], %s237_s23 }
  0x88   : > { %2530 = dma.done.wait (%p3015_p8), %s238_s5, 128  }
  0x89   : > { %2532 = vsyncadd (%p3015_p8), %s238_s5, 4294967168  ;;  %p3016_p11 = scmp.eq.s32.totalorder %s2623_s19, 0 }
  0x8b   : > { %2534 = dma.done.wait (%p3016_p11), [#allocation6], 25600   ;;  %p3017_p0 = pmov %p3016_p11 }
  0x8d   : > { %2536 = vsyncadd (%p3017_p0), [#allocation6], 4294941696  ;;  %p3018_p9 = pmov %p3017_p0 }
  0x8e   : > { %p3019_p12 = pmov %p3017_p0 }
  0x8f   : > { %2538 = dma.done.wait (%p3018_p9), [#allocation9], 512  }
  0x90   : > { %2540 = vsyncadd (%p3019_p12), [#allocation9], 4294966784  ;;  %v2567_v0 = vmov 0.0|0.0   ;;  %vm2568_vm0 = vmmov 0   ;;  %v2569_v1 = vmov 0.0   ;;  %v295_v2 = vld [vmem:[#allocation7 + $0x100] sm:$0xff] }
  0x91   : > { %2128 = vmatprep.subr.bf16.mxu1 %v2567_v0  ;;  %2104 = vmatprep.subr.bf16.mxu0 %v2567_v0  ;;  %v296_v3 = vld [vmem:[#allocation7 + $0x110] sm:$0xff]  ;;  %v279_v4 = vld [vmem:[#allocation7] sm:$0xff]  ;;  %v328_v48 = vld [vmem:[#allocation7 + $0x308] sm:$0xff]  ;;  %vm723_vm1 = vcmask 64512   ;;  %s2570_s21 = smov 112   ;;  %s2571_s12 = smov 120  }
  0x92   : > { %1945 = vmatprep.mubr.msk.f32.mxu1 %vm2568_vm0, %v2569_v1  ;;  %1910 = vmatprep.mubr.msk.f32.mxu0 %vm2568_vm0, %v2569_v1  ;;  %v2129_v5 = vpack.c.bf16 %v296_v3, %v295_v2  ;;  %v280_v6 = vld [vmem:[#allocation7 + $0x10] sm:$0xff]  ;;  %v297_v7 = vld [vmem:[#allocation7 + $0x120] sm:$0xff]  ;;  %v330_v49 = vld [vmem:[#allocation7 + $0x318] sm:$0xff]  ;;  %s2572_s24 = smov 104   ;;  %s2573_s20 = smov 8   ;;  %vm1369_vm2 = vcmask 130048  }
  0x93   : > { %v298_v8 = vld [vmem:[#allocation7 + $0x130] sm:$0xff]  ;;  %v2105_v9 = vpack.c.bf16 %v280_v6, %v279_v4  ;;  %v281_v10 = vld [vmem:[#allocation7 + $0x20] sm:$0xff]  ;;  %v2176_v52 = vpack.c.bf16 %v330_v49, %v328_v48  ;;  %v332_v57 = vld [vmem:[#allocation7 + $0x328] sm:$0xff]  ;;  %s2574_s11 = smov 16   ;;  %s2575_s25 = smov 24   ;;  %vm1371_vm3 = vcmask 195584  }
  0x94   : > { %v282_v11 = vld [vmem:[#allocation7 + $0x30] sm:$0xff]  ;;  %2130 = vmatpush3.bf16.msra.mxu1 %v2129_v5  ;;  %v2132_v12 = vpack.c.bf16 %v298_v8, %v297_v7  ;;  %v299_v14 = vld [vmem:[#allocation7 + $0x140] sm:$0xff]  ;;  %v334_v58 = vld [vmem:[#allocation7 + $0x338] sm:$0xff]  ;;  %vm1373_vm4 = vcmask 261120   ;;  %s1769_s2 = sshll.u32 %s2623_s19, 7  ;;  %s278_s28 = scalar_lea.vmem [#allocation10], %s2805_s10 }
  0x95   : > { %2106 = vmatpush3.bf16.msra.mxu0 %v2105_v9  ;;  %2131 = vmatprep.subr.bf16.mxu1 %v2567_v0  ;;  %v2108_v13 = vpack.c.bf16 %v282_v11, %v281_v10  ;;  %v300_v15 = vld [vmem:[#allocation7 + $0x150] sm:$0xff]  ;;  %v283_v16 = vld [vmem:[#allocation7 + $0x40] sm:$0xff]  ;;  %v2180_v63 = vpack.c.bf16 %v334_v58, %v332_v57  ;;  %v336_v6 = vld [vmem:[#allocation7 + $0x348] sm:$0xff]  ;;  %s1627_s27 = sshll.u32 %s278_s28, 4  ;;  %s2952_s29 = scalar_lea.hbm %s3000_s4, %s1769_s2  ;;  %s2954_s27 = int_to_ptr.vmem [resolvable:$true] %s1627_s27 }
  0x96   : > { %2107 = vmatprep.subr.bf16.mxu0 %v2567_v0  ;;  %v284_v17 = vld [vmem:[#allocation7 + $0x50] sm:$0xff]  ;;  %v2135_v18 = vpack.c.bf16 %v300_v15, %v299_v14  ;;  %v301_v20 = vld [vmem:[#allocation7 + $0x160] sm:$0xff]  ;;  %v338_v7 = vld [vmem:[#allocation7 + $0x358] sm:$0xff]  ;;  %s2481_s23 = scalar_lea.vmem %s2954_s27, 128  ;;  %p3020_p13 = scmp.ne.s32.totalorder %s3012_s13, 0 }
  0x97   : > { %v2111_v19 = vpack.c.bf16 %v284_v17, %v283_v16  ;;  %v302_v21 = vld [vmem:[#allocation7 + $0x170] sm:$0xff]  ;;  %v285_v22 = vld [vmem:[#allocation7 + $0x60] sm:$0xff]  ;;  %v2184_v10 = vpack.c.bf16 %v338_v7, %v336_v6  ;;  %v340_v15 = vld [vmem:[#allocation7 + $0x368] sm:$0xff]  ;;  %p2482_p2 = scmp.ne.s32.totalorder %s2954_s27, %s2481_s23  ;;  %s2576_s19 = smov [#allocation10]  }
  0x98   : > { %2133 = vmatpush3.bf16.msra.mxu1 %v2132_v12  ;;  %v286_v23 = vld [vmem:[#allocation7 + $0x70] sm:$0xff]  ;;  %v2138_v24 = vpack.c.bf16 %v302_v21, %v301_v20  ;;  %v303_v26 = vld [vmem:[#allocation7 + $0x180] sm:$0xff]  ;;  %v342_v16 = vld [vmem:[#allocation7 + $0x378] sm:$0xff]  ;;  %s2485_s10 = sshll.u32 %s2576_s19, 4  ;;  %s2486_s10 = int_to_ptr.vmem [resolvable:$false] %s2485_s10 }
  0x99   : > { %2109 = vmatpush3.bf16.msra.mxu0 %v2108_v13  ;;  %2134 = vmatprep.subr.bf16.mxu1 %v2567_v0  ;;  %v2114_v25 = vpack.c.bf16 %v286_v23, %v285_v22  ;;  %v304_v27 = vld [vmem:[#allocation7 + $0x190] sm:$0xff]  ;;  %v287_v28 = vld [vmem:[#allocation7 + $0x80] sm:$0xff]  ;;  %p2483_p6 = pnand %p2482_p2, %p3020_p13  ;;  %s2487_s5 = scalar_lea.vmem %s2486_s10, 256 }
  0x9a   : > { %2110 = vmatprep.subr.bf16.mxu0 %v2567_v0  ;;  %v288_v29 = vld [vmem:[#allocation7 + $0x90] sm:$0xff]  ;;  %v2141_v30 = vpack.c.bf16 %v304_v27, %v303_v26  ;;  %v305_v32 = vld [vmem:[#allocation7 + $0x1a0] sm:$0xff]  ;;  %p2488_p4 = scmp.lt.s32.totalorder %s2954_s27, %s2486_s10  ;;  %p2489_p5 = scmp.lt.s32.totalorder %s2487_s5, %s2481_s23 }
  0x9b   : > { %v2117_v31 = vpack.c.bf16 %v288_v29, %v287_v28  ;;  %v306_v33 = vld [vmem:[#allocation7 + $0x1b0] sm:$0xff]  ;;  %v289_v34 = vld [vmem:[#allocation7 + $0xa0] sm:$0xff]  ;;  %p2484_p10 = pneg %p2483_p6 }
  0x9c   : > { %2136 = vmatpush3.bf16.msra.mxu1 %v2135_v18  ;;  %v290_v35 = vld [vmem:[#allocation7 + $0xb0] sm:$0xff]  ;;  %v2144_v36 = vpack.c.bf16 %v306_v33, %v305_v32  ;;  %v307_v38 = vld [vmem:[#allocation7 + $0x1c0] sm:$0xff]  ;;  %v348_v33 = vld [vmem:[#allocation7 + $0x3a8] sm:$0xff]  ;;  %p2490_p3 = por %p2489_p5, %p2488_p4 }
  0x9d   : > { %2112 = vmatpush3.bf16.msra.mxu0 %v2111_v19  ;;  %2137 = vmatprep.subr.bf16.mxu1 %v2567_v0  ;;  %v2120_v37 = vpack.c.bf16 %v290_v35, %v289_v34  ;;  %v308_v39 = vld [vmem:[#allocation7 + $0x1d0] sm:$0xff]  ;;  %v291_v40 = vld [vmem:[#allocation7 + $0xc0] sm:$0xff]  ;;  %v2188_v19 = vpack.c.bf16 %v342_v16, %v340_v15  ;;  %v350_v34 = vld [vmem:[#allocation7 + $0x3b8] sm:$0xff] }
  0x9e   : > { %2113 = vmatprep.subr.bf16.mxu0 %v2567_v0  ;;  %v292_v41 = vld [vmem:[#allocation7 + $0xd0] sm:$0xff]  ;;  %v2147_v42 = vpack.c.bf16 %v308_v39, %v307_v38  ;;  %v309_v44 = vld [vmem:[#allocation7 + $0x1e0] sm:$0xff]  ;;  %p2491_p7 = pnand %p2490_p3, %p2484_p10 }
  0x9f   : > { %v2123_v43 = vpack.c.bf16 %v292_v41, %v291_v40  ;;  %v310_v45 = vld [vmem:[#allocation7 + $0x1f0] sm:$0xff]  ;;  %v293_v46 = vld [vmem:[#allocation7 + $0xe0] sm:$0xff] }
  0xa0   : > { %2139 = vmatpush3.bf16.msra.mxu1 %v2138_v24  ;;  %v294_v47 = vld [vmem:[#allocation7 + $0xf0] sm:$0xff]  ;;  %v2150_v50 = vpack.c.bf16 %v310_v45, %v309_v44  ;;  %v327_v53 = vld [vmem:[#allocation7 + $0x300] sm:$0xff]  ;;  %v344_v24 = vld [vmem:[#allocation7 + $0x388] sm:$0xff] }
  0xa1   : > { %2115 = vmatpush3.bf16.msra.mxu0 %v2114_v25  ;;  %2140 = vmatprep.subr.bf16.mxu1 %v2567_v0  ;;  %v2126_v51 = vpack.c.bf16 %v294_v47, %v293_v46  ;;  %v329_v54 = vld [vmem:[#allocation7 + $0x310] sm:$0xff]  ;;  %v311_v55 = vld [vmem:[#allocation7 + $0x200] sm:$0xff]  ;;  %v346_v25 = vld [vmem:[#allocation7 + $0x398] sm:$0xff] }
  0xa2   : > { %2116 = vmatprep.subr.bf16.mxu0 %v2567_v0  ;;  %v312_v56 = vld [vmem:[#allocation7 + $0x210] sm:$0xff]  ;;  %v405_v60 = vld [vmem:[%s232_s6] sm:$0xff]  ;;  %v2178_v61 = vpack.c.bf16 %v329_v54, %v327_v53  ;;  %v2192_v28 = vpack.c.bf16 %v346_v25, %v344_v24  ;;  %s1614_s6 = scalar_lea.sflag [#allocation4], %s2802_s26 }
  0xa3   : > { %v476_v59 = vld [vmem:[%s241_s7] sm:$0xff]  ;;  %v2153_v62 = vpack.c.bf16 %v312_v56, %v311_v55  ;;  %v331_v2 = vld [vmem:[#allocation7 + $0x320] sm:$0xff] }
  0xa4   : > { %2142 = vmatpush3.bf16.msra.mxu1 %v2141_v30  ;;  %v333_v3 = vld [vmem:[#allocation7 + $0x330] sm:$0xff]  ;;  %v313_v4 = vld [vmem:[#allocation7 + $0x220] sm:$0xff] }
  0xa5   : > { %2118 = vmatpush3.bf16.msra.mxu0 %v2117_v31  ;;  %2143 = vmatprep.subr.bf16.mxu1 %v2567_v0  ;;  %v314_v5 = vld [vmem:[#allocation7 + $0x230] sm:$0xff]  ;;  %v2182_v8 = vpack.c.bf16 %v333_v3, %v331_v2  ;;  %v335_v11 = vld [vmem:[#allocation7 + $0x340] sm:$0xff] }
  0xa6   : > { %2119 = vmatprep.subr.bf16.mxu0 %v2567_v0  ;;  %v2156_v9 = vpack.c.bf16 %v314_v5, %v313_v4  ;;  %v337_v12 = vld [vmem:[#allocation7 + $0x350] sm:$0xff]  ;;  %v315_v13 = vld [vmem:[#allocation7 + $0x240] sm:$0xff] }
  0xa7   : > { %v316_v14 = vld [vmem:[#allocation7 + $0x250] sm:$0xff]  ;;  %v2186_v17 = vpack.c.bf16 %v337_v12, %v335_v11  ;;  %v339_v20 = vld [vmem:[#allocation7 + $0x360] sm:$0xff] }
  0xa8   : > { %2145 = vmatpush3.bf16.msra.mxu1 %v2144_v36  ;;  %v2159_v18 = vpack.c.bf16 %v316_v14, %v315_v13  ;;  %v341_v21 = vld [vmem:[#allocation7 + $0x370] sm:$0xff]  ;;  %v317_v22 = vld [vmem:[#allocation7 + $0x260] sm:$0xff] }
  0xa9   : > { %2121 = vmatpush3.bf16.msra.mxu0 %v2120_v37  ;;  %2146 = vmatprep.subr.bf16.mxu1 %v2567_v0  ;;  %v318_v23 = vld [vmem:[#allocation7 + $0x270] sm:$0xff]  ;;  %v2190_v26 = vpack.c.bf16 %v341_v21, %v339_v20  ;;  %v343_v29 = vld [vmem:[#allocation7 + $0x380] sm:$0xff]  ;;  %v2196_v37 = vpack.c.bf16 %v350_v34, %v348_v33 }
  0xaa   : > { %2122 = vmatprep.subr.bf16.mxu0 %v2567_v0  ;;  %v2162_v27 = vpack.c.bf16 %v318_v23, %v317_v22  ;;  %v345_v30 = vld [vmem:[#allocation7 + $0x390] sm:$0xff]  ;;  %v319_v31 = vld [vmem:[#allocation7 + $0x280] sm:$0xff] }
  0xab   : > { %v320_v32 = vld [vmem:[#allocation7 + $0x290] sm:$0xff]  ;;  %v2194_v35 = vpack.c.bf16 %v345_v30, %v343_v29  ;;  %v347_v38 = vld [vmem:[#allocation7 + $0x3a0] sm:$0xff] }
  0xac   : > { %2148 = vmatpush3.bf16.msra.mxu1 %v2147_v42  ;;  %v2165_v36 = vpack.c.bf16 %v320_v32, %v319_v31  ;;  %v349_v39 = vld [vmem:[#allocation7 + $0x3b0] sm:$0xff]  ;;  %v321_v40 = vld [vmem:[#allocation7 + $0x2a0] sm:$0xff]  ;;  %v352_v42 = vld [vmem:[#allocation7 + $0x3c8] sm:$0xff] }
  0xad   : > { %2124 = vmatpush3.bf16.msra.mxu0 %v2123_v43  ;;  %2149 = vmatprep.subr.bf16.mxu1 %v2567_v0  ;;  %v322_v41 = vld [vmem:[#allocation7 + $0x2b0] sm:$0xff]  ;;  %v354_v43 = vld [vmem:[#allocation7 + $0x3d8] sm:$0xff]  ;;  %v2198_v44 = vpack.c.bf16 %v349_v39, %v347_v38  ;;  %v351_v47 = vld [vmem:[#allocation7 + $0x3c0] sm:$0xff] }
  0xae   : > { %2125 = vmatprep.subr.bf16.mxu0 %v2567_v0  ;;  %v2168_v45 = vpack.c.bf16 %v322_v41, %v321_v40  ;;  %v2200_v46 = vpack.c.bf16 %v354_v43, %v352_v42  ;;  %v353_v48 = vld [vmem:[#allocation7 + $0x3d0] sm:$0xff]  ;;  %v323_v49 = vld [vmem:[#allocation7 + $0x2c0] sm:$0xff] }
  0xaf   : > { %v2202_v53 = vpack.c.bf16 %v353_v48, %v351_v47  ;;  %v355_v56 = vld [vmem:[#allocation7 + $0x3e0] sm:$0xff]  ;;  %v357_v57 = vld [vmem:[#allocation7 + $0x3f0] sm:$0xff] }
  0xb0   : > { %2151 = vmatpush3.bf16.msra.mxu1 %v2150_v50  ;;  %v324_v50 = vld [vmem:[#allocation7 + $0x2d0] sm:$0xff]  ;;  %v2206_v58 = vpack.c.bf16 %v357_v57, %v355_v56  ;;  %v399_v11 = vld [vmem:[#allocation8 + $0x3] ss:$8 sm:$0x3]  ;;  %v397_v14 = vld [vmem:[#allocation8 + $0x2] ss:$0 sm:$0xff] }
  0xb1   : > { %2127 = vmatpush3.bf16.msra.mxu0 %v2126_v51  ;;  %2177 = vmatprep.subr.bf16.mxu1 %v2176_v52  ;;  %v356_v51 = vld [vmem:[#allocation7 + $0x3e8] sm:$0xff]  ;;  %v358_v52 = vld [vmem:[#allocation7 + $0x3f8] sm:$0xff]  ;;  %v2171_v54 = vpack.c.bf16 %v324_v50, %v323_v49 }
  0xb2   : > { %2152 = vmatprep.subr.bf16.mxu0 %v2567_v0  ;;  %v2204_v55 = vpack.c.bf16 %v358_v52, %v356_v51 }
  0xb3   : > { %1946 = vmatmul.mubr.f32.vlgmr.msra.gmra.mrb[0].mxu1 %v476_v59  ;;  %v325_v59 = vld [vmem:[#allocation7 + $0x2e0] sm:$0xff] }
  0xb4   : > { %1911 = vmatmul.mubr.f32.vlgmr.msra.gmra.mrb[0].mxu0 %v405_v60  ;;  %2179 = vmatpush1.bf16.msra.mxu1 %v2178_v61  ;;  %v326_v60 = vld [vmem:[#allocation7 + $0x2f0] sm:$0xff] }
  0xb5   : > { %2154 = vmatpush3.bf16.msra.mxu0 %v2153_v62  ;;  %2181 = vmatprep.subr.bf16.mxu1 %v2180_v63  ;;  %v2174_v61 = vpack.c.bf16 %v326_v60, %v325_v59  ;;  %v396_v62 = vld [vmem:[#allocation8 + $0x1] ss:$0 sm:$0xff]  ;;  %v395_v63 = vld [vmem:[#allocation8] ss:$0 sm:$0xff] }
  0xb6   : > { %2155 = vmatprep.subr.bf16.mxu0 %v2567_v0  ;;  %692 = vmatprep.mubr.f32.mxu1 %v2569_v1 }
  0xb7   : > { %1980 = vmatprep.mubr.msk.f32.mxu0 %vm2568_vm0, %v2569_v1 }
  0xb8   : > { %2183 = vmatpush1.bf16.msra.mxu1 %v2182_v8  ;;  %v618_v8 = vlaneseq }
  0xb9   : > { %2157 = vmatpush3.bf16.msra.mxu0 %v2156_v9  ;;  %2185 = vmatprep.subr.bf16.mxu1 %v2184_v10 }
  0xba   : > { %2158 = vmatprep.subr.bf16.mxu0 %v2567_v0  ;;  %v619_v9 = vshrl.u32 %v618_v8, 7 }
  0xbc   : > { %2187 = vmatpush1.bf16.msra.mxu1 %v2186_v17  ;;  %v620_v10 = vsub.s32 0, %v619_v9  ;;  %v624_v22 = vsub.s32 1, %v619_v9 }
  0xbd   : > { %2160 = vmatpush3.bf16.msra.mxu0 %v2159_v18  ;;  %2189 = vmatprep.subr.bf16.mxu1 %v2188_v19 }
  0xbe   : > { %2161 = vmatprep.subr.bf16.mxu0 %v2567_v0  ;;  %v621_v12 = vrot.slane %v399_v11, %v620_v10  ;;  %v625_v24 = vrot.slane %v399_v11, %v624_v22  ;;  %v362_v22 = vld [vmem:[#allocation7 + $0x430] sm:$0xff] }
  0xc0   : > { %2191 = vmatpush1.bf16.msra.mxu1 %v2190_v26 }
  0xc1   : > { %2163 = vmatpush3.bf16.msra.mxu0 %v2162_v27  ;;  %2193 = vmatprep.subr.bf16.mxu1 %v2192_v28 }
  0xc2   : > { %2164 = vmatprep.subr.bf16.mxu0 %v2567_v0 }
  0xc4   : > { %2195 = vmatpush1.bf16.msra.mxu1 %v2194_v35 }
  0xc5   : > { %2166 = vmatpush3.bf16.msra.mxu0 %v2165_v36  ;;  %2197 = vmatprep.subr.bf16.mxu1 %v2196_v37 }
  0xc6   : > { %2167 = vmatprep.subr.bf16.mxu0 %v2567_v0 }
  0xc8   : > { %2199 = vmatpush1.bf16.msra.mxu1 %v2198_v44 }
  0xc9   : > { %2169 = vmatpush3.bf16.msra.mxu0 %v2168_v45  ;;  %2201 = vmatprep.subr.bf16.mxu1 %v2200_v46 }
  0xca   : > { %2170 = vmatprep.subr.bf16.mxu0 %v2567_v0 }
  0xcc   : > { %2203 = vmatpush1.bf16.msra.mxu1 %v2202_v53 }
  0xcd   : > { %2172 = vmatpush3.bf16.msra.mxu0 %v2171_v54  ;;  %2205 = vmatprep.subr.bf16.mxu1 %v2204_v55 }
  0xce   : > { %2173 = vmatprep.subr.bf16.mxu0 %v2567_v0 }
  0xd0   : > { %2207 = vmatpush1.bf16.msra.mxu1 %v2206_v58 }
  0xd1   : > { %1983 = vmatprep.subr.mxu1 %v2569_v1  ;;  %2175 = vmatpush3.bf16.msra.mxu0 %v2174_v61 }
  0xd2   : > { %1993 = vmatprep.subr.mxu0 %v2569_v1 }
 0x186   : > { %v543_v2 = vpop.f32.mrb[0].mxu1 }
 0x187   : > { %v544_v3 = vadd.f32 %v543_v2, %v396_v62  ;;  %v1947_v4 = vpop.f32.mrb[1].mxu1  ;;  %v472_v5 = vpop.f32.mrb[0].mxu0 }
 0x188   : > { %v2864_v6 = vadd.f32 %v472_v5, %v395_v63  ;;  %v1912_v7 = vpop.f32.mrb[1].mxu0 }
 0x189   : > { %693 = vmatmul.mubr.f32.vlgmr.msra.gmra.mrb[2].mxu1 %v544_v3 }
 0x18a   : > { %1981 = vmatmul.mubr.f32.vlgmr.msra.gmra.mrb[2].mxu0 %v2864_v6  ;;  %1985 = vmatprep.mubr.msk.f32.mxu1 %vm2568_vm0, %v2569_v1 }
 0x18b   : > { %1995 = vmatprep.mubr.msk.f32.mxu0 %vm2568_vm0, %v2569_v1 }
 0x25c   : > { %v694_v13 = vpop.f32.mrb[2].mxu1 }
 0x25d   : > { %v695_v15 = vadd.f32 %v694_v13, %v621_v12  ;;  %v696_v16 = vpop.f32.mrb[3].mxu1  ;;  %v613_v17 = vpop.f32.mrb[2].mxu0 }
 0x25e   : > { %v1982_v18 = vpop.f32.mrb[3].mxu0  ;;  %v614_v19 = vadd.f32 %v613_v17, %v397_v14  ;;  %v697_v27 = vadd.f32 %v696_v16, %v625_v24 }
 0x25f   : > { %709 = vrot.lane.b32.xlu1 %v695_v15, %s2570_s21  ;;  %707 = vrot.lane.b32.xlu0 %v695_v15, %s2571_s12  ;;  %v359_v18 = vld [vmem:[#allocation7 + $0x400] sm:$0xff] }
 0x260   : > { %1984 = vmatpush3.xpose.msk.msra.mxu1 %vm723_vm1, %v695_v15 }
 0x261   : > { %1988 = vmatprep.subr.mxu1 %v2569_v1 }
 0x263   : > { %1986 = vmatmul.mubr.msk.f32.vlgmr.msra.gmra.mrb[4].mxu1 %vm723_vm1, %v614_v19  ;;  %711 = vrot.lane.b32.xlu1 %v695_v15, %s2572_s24 }
 0x264   : > { %700 = vrot.lane.b32.xlu0 %v614_v19, %s2571_s12  ;;  %1990 = vmatprep.mubr.msk.f32.mxu1 %vm2568_vm0, %v2569_v1 }
 0x267   : > { %704 = vrot.lane.b32.xlu1 %v614_v19, %s2572_s24 }
 0x268   : > { %702 = vrot.lane.b32.xlu0 %v614_v19, %s2570_s21  ;;  %v360_v19 = vld [vmem:[#allocation7 + $0x410] sm:$0xff] }
 0x2d1   : > { %v710_v20 = vpop.permute.xlu1 %709  ;;  %v708_v21 = vpop.permute.xlu0 %707 }
 0x2d2   : > { %1989 = vmatpush3.xpose.msk.msra.mxu1 %vm723_vm1, %v708_v21  ;;  %1994 = vmatpush3.xpose.msk.msra.mxu0 %vm723_vm1, %v710_v20  ;;  %v2209_v20 = vpack.c.bf16 %v360_v19, %v359_v18  ;;  %v361_v21 = vld [vmem:[#allocation7 + $0x420] sm:$0xff] }
 0x2d3   : > { %1998 = vmatprep.subr.mxu1 %v2569_v1  ;;  %2003 = vmatprep.subr.mxu0 %v2569_v1 }
 0x2d5   : > { %v712_v23 = vpop.permute.xlu1 %711 }
 0x2d6   : > { %v701_v25 = vpop.permute.xlu0 %700 }
 0x2d7   : > { %1991 = vmatmul.mubr.msk.f32.vlgmr.msra.gmra.mrb[6].mxu1 %vm723_vm1, %v701_v25 }
 0x2d8   : > { %1999 = vmatpush3.xpose.msk.msra.mxu1 %vm723_vm1, %v712_v23  ;;  %2000 = vmatprep.mubr.msk.f32.mxu1 %vm2568_vm0, %v2569_v1  ;;  %v2212_v23 = vpack.c.bf16 %v362_v22, %v361_v21  ;;  %v403_v22 = vld [vmem:[#allocation8 + $0x7] ss:$0 sm:$0xff] }
 0x2d9   : > { %v705_v26 = vpop.permute.xlu1 %704  ;;  %2008 = vmatprep.subr.mxu1 %v2569_v1 }
 0x2da   : > { %v703_v28 = vpop.permute.xlu0 %702 }
 0x2db   : > { %1996 = vmatmul.mubr.msk.f32.vlgmr.msra.gmra.mrb[4].mxu0 %vm723_vm1, %v703_v28  ;;  %2001 = vmatmul.mubr.msk.f32.vlgmr.msra.gmra.mrb[8].mxu1 %vm723_vm1, %v705_v26 }
 0x2dc   : > { %2004 = vmatpush3.msra.mxu0 %v697_v27  ;;  %2005 = vmatprep.mubr.msk.f32.mxu0 %vm2568_vm0, %v2569_v1 }
 0x2dd   : > { %2013 = vmatprep.subr.mxu0 %v2569_v1  ;;  %2010 = vmatprep.mubr.msk.f32.mxu1 %vm2568_vm0, %v2569_v1 }
 0x336   : > { %v794_v29 = vpop.f32.mrb[4].mxu1 }
 0x337   : > { %v1987_v30 = vpop.f32.mrb[5].mxu1  ;;  %v1020_v31 = vsel %vm723_vm1, %v794_v29, -inf }
 0x338   : > { %1021 = vmax.xlane.f32.xlu0 %v1020_v31 }
 0x3aa   : > { %v868_v32 = vpop.f32.mrb[6].mxu1 }
 0x3ab   : > { %v1992_v33 = vpop.f32.mrb[7].mxu1  ;;  %v1023_v34 = vsel %vm723_vm1, %v868_v32, -inf }
 0x3ac   : > { %1024 = vmax.xlane.f32.xlu1 %v1023_v34 }
 0x3ae   : > { %v942_v35 = vpop.f32.mrb[4].mxu0  ;;  %v1016_v36 = vpop.f32.mrb[8].mxu1 }
 0x3af   : > { %v1997_v37 = vpop.f32.mrb[5].mxu0  ;;  %v2002_v38 = vpop.f32.mrb[9].mxu1  ;;  %v1026_v39 = vsel %vm723_vm1, %v942_v35, -inf  ;;  %v1029_v40 = vsel %vm723_vm1, %v1016_v36, -inf }
 0x3b0   : > { %1027 = vmax.xlane.f32.xlu0 %v1026_v39 }
 0x3b4   : > { %1030 = vmax.xlane.f32.xlu0 %v1029_v40 }
 0x3bd   : > { %714 = vrot.lane.b32.xlu1 %v697_v27, %s2571_s12 }
 0x3c5   : > { %v1022_v41 = vpop.xlane.xlu0 %1021 }
 0x3c6   : > { %v1032_v42 = vsub.f32 %v794_v29, %v1022_v41  ;;  %v363_v41 = vld [vmem:[#allocation7 + $0x440] sm:$0xff] }
 0x3c8   : > { %v1036_v43 = vmul.f32 1.442695, %v1032_v42  ;;  %v364_v42 = vld [vmem:[#allocation7 + $0x450] sm:$0xff] }
 0x3ca   : > { %2345 = vpow2.f32 %v1036_v43  ;;  %v365_v43 = vld [vmem:[#allocation7 + $0x460] sm:$0xff] }
 0x3d4   : > { %v2346_v44 = vpop.eup %2345 }
 0x3d5   : > { %v1044_v45 = vsel %vm723_vm1, %v2346_v44, 0.0 }
 0x3e1   : > { %1045 = vadd.xlane.f32.xlu1 %v1044_v45  ;;  %v366_v45 = vld [vmem:[#allocation7 + $0x470] sm:$0xff] }
 0x439   : > { %v1025_v46 = vpop.xlane.xlu1 %1024 }
 0x43a   : > { %v1033_v47 = vsub.f32 %v868_v32, %v1025_v46  ;;  %v2218_v46 = vpack.c.bf16 %v366_v45, %v365_v43 }
 0x43c   : > { %v1038_v48 = vmul.f32 1.442695, %v1033_v47  ;;  %v367_v47 = vld [vmem:[#allocation7 + $0x480] sm:$0xff] }
 0x43d   : > { %v715_v49 = vpop.permute.xlu1 %714  ;;  %v1028_v50 = vpop.xlane.xlu0 %1027 }
 0x43e   : > { %2347 = vpow2.f32 %v1038_v48  ;;  %v1034_v51 = vsub.f32 %v942_v35, %v1028_v50  ;;  %2009 = vmatpush3.msra.mxu1 %v715_v49  ;;  %v368_v48 = vld [vmem:[#allocation7 + $0x490] sm:$0xff] }
 0x43f   : > { %2018 = vmatprep.subr.mxu1 %v2569_v1  ;;  %v2221_v49 = vpack.c.bf16 %v368_v48, %v367_v47 }
 0x440   : > { %v1040_v52 = vmul.f32 1.442695, %v1034_v51 }
 0x441   : > { %v1031_v53 = vpop.xlane.xlu0 %1030 }
 0x442   : > { %2349 = vpow2.f32 %v1040_v52  ;;  %v1035_v54 = vsub.f32 %v1016_v36, %v1031_v53  ;;  %v400_v36 = vld [vmem:[#allocation8 + $0x4] ss:$0 sm:$0xff] }
 0x444   : > { %v1042_v55 = vmul.f32 1.442695, %v1035_v54 }
 0x446   : > { %2351 = vpow2.f32 %v1042_v55 }
 0x448   : > { %v2348_v56 = vpop.eup %2347 }
 0x449   : > { %v1047_v57 = vsel %vm723_vm1, %v2348_v56, 0.0 }
 0x44a   : > { %1048 = vadd.xlane.f32.xlu0 %v1047_v57  ;;  %v370_v57 = vld [vmem:[#allocation7 + $0x4b0] sm:$0xff] }
 0x44c   : > { %v2350_v58 = vpop.eup %2349 }
 0x44d   : > { %v1050_v59 = vsel %vm723_vm1, %v2350_v58, 0.0 }
 0x44e   : > { %1051 = vadd.xlane.f32.xlu1 %v1050_v59  ;;  %v371_v59 = vld [vmem:[#allocation7 + $0x4c0] sm:$0xff] }
 0x450   : > { %v2352_v60 = vpop.eup %2351 }
 0x451   : > { %v1053_v61 = vsel %vm723_vm1, %v2352_v60, 0.0 }
 0x452   : > { %1054 = vadd.xlane.f32.xlu0 %v1053_v61  ;;  %v373_v61 = vld [vmem:[#allocation7 + $0x4e0] sm:$0xff] }
 0x45f   : > { %720 = vrot.lane.b32.xlu1 %v697_v27, %s2572_s24 }
 0x468   : > { %717 = vrot.lane.b32.xlu0 %v697_v27, %s2570_s21 }
 0x46e   : > { %v1046_v62 = vpop.xlane.xlu1 %1045 }
 0x46f   : > { %2353 = vrcp.f32 %v1046_v62 }
 0x479   : > { %v2354_v63 = vpop.eup %2353 }
 0x47a   : > { %v1060_v2 = vmul.f32 %v2354_v63, %v2346_v44  ;;  %v2215_v44 = vpack.c.bf16 %v364_v42, %v363_v41  ;;  %v401_v42 = vld [vmem:[#allocation8 + $0x5] ss:$0 sm:$0xff] }
 0x47c   : > { %2006 = vmatmul.mubr.msk.f32.vlgmr.msra.gmra.mrb[6].mxu0 %vm723_vm1, %v1060_v2  ;;  %v376_v2 = vld [vmem:[#allocation7 + $0x510] sm:$0xff] }
 0x47d   : > { %2015 = vmatprep.mubr.msk.f32.mxu0 %vm2568_vm0, %v2569_v1 }
 0x4d7   : > { %v1049_v3 = vpop.xlane.xlu0 %1048 }
 0x4d8   : > { %2355 = vrcp.f32 %v1049_v3 }
 0x4db   : > { %v1052_v4 = vpop.xlane.xlu1 %1051 }
 0x4dc   : > { %2357 = vrcp.f32 %v1052_v4  ;;  %v377_v4 = vld [vmem:[#allocation7 + $0x520] sm:$0xff] }
 0x4df   : > { %v1055_v5 = vpop.xlane.xlu0 %1054  ;;  %v721_v11 = vpop.permute.xlu1 %720 }
 0x4e0   : > { %2359 = vrcp.f32 %v1055_v5  ;;  %v378_v5 = vld [vmem:[#allocation7 + $0x530] sm:$0xff] }
 0x4e2   : > { %v2356_v7 = vpop.eup %2355 }
 0x4e3   : > { %v1061_v9 = vmul.f32 %v2356_v7, %v2348_v56  ;;  %v718_v10 = vpop.permute.xlu0 %717  ;;  %v369_v56 = vld [vmem:[#allocation7 + $0x4a0] sm:$0xff]  ;;  %v2236_v7 = vpack.c.bf16 %v378_v5, %v377_v4 }
 0x4e4   : > { %2014 = vmatpush3.msra.mxu0 %v718_v10  ;;  %v380_v10 = vld [vmem:[#allocation7 + $0x550] sm:$0xff] }
 0x4e5   : > { %2011 = vmatmul.mubr.msk.f32.vlgmr.msra.gmra.mrb[10].mxu1 %vm723_vm1, %v1061_v9  ;;  %2208 = vmatprep.subr.bf16.mxu0 %v2567_v0  ;;  %v379_v9 = vld [vmem:[#allocation7 + $0x540] sm:$0xff] }
 0x4e6   : > { %v2358_v12 = vpop.eup %2357  ;;  %2019 = vmatpush3.msra.mxu1 %v721_v11  ;;  %2020 = vmatprep.mubr.msk.f32.mxu1 %vm2568_vm0, %v2569_v1  ;;  %v381_v11 = vld [vmem:[#allocation7 + $0x560] sm:$0xff] }
 0x4e7   : > { %v1062_v13 = vmul.f32 %v2358_v12, %v2350_v58  ;;  %2214 = vmatprep.subr.bf16.mxu1 %v2567_v0  ;;  %v2224_v58 = vpack.c.bf16 %v370_v57, %v369_v56  ;;  %v2239_v12 = vpack.c.bf16 %v380_v10, %v379_v9 }
 0x4e9   : > { %2016 = vmatmul.mubr.msk.f32.vlgmr.msra.gmra.mrb[8].mxu0 %vm723_vm1, %v1062_v13  ;;  %v382_v13 = vld [vmem:[#allocation7 + $0x570] sm:$0xff] }
 0x4ea   : > { %v2360_v14 = vpop.eup %2359  ;;  %2031 = vmatprep.mubr.msk.f32.mxu0 %vm2568_vm0, %v2569_v1  ;;  %2210 = vmatpush3.bf16.msra.mxu0 %v2209_v20 }
 0x4eb   : > { %v1063_v15 = vmul.f32 %v2360_v14, %v2352_v60  ;;  %2211 = vmatprep.subr.bf16.mxu0 %v2567_v0  ;;  %v372_v60 = vld [vmem:[#allocation7 + $0x4d0] sm:$0xff]  ;;  %v2242_v14 = vpack.c.bf16 %v382_v13, %v381_v11 }
 0x4ec   : > { %v2227_v62 = vpack.c.bf16 %v372_v60, %v371_v59 }
 0x4ed   : > { %2021 = vmatmul.mubr.msk.f32.vlgmr.msra.gmra.mrb[12].mxu1 %vm723_vm1, %v1063_v15  ;;  %v383_v15 = vld [vmem:[#allocation7 + $0x580] sm:$0xff] }
 0x4ee   : > { %2066 = vmatprep.mubr.msk.f32.mxu1 %vm2568_vm0, %v2569_v1  ;;  %2213 = vmatpush3.bf16.msra.mxu0 %v2212_v23 }
 0x4ef   : > { %2238 = vmatprep.subr.bf16.mxu0 %v2567_v0  ;;  %2216 = vmatpush3.bf16.msra.mxu1 %v2215_v44 }
 0x4f0   : > { %2217 = vmatprep.subr.bf16.mxu1 %v2567_v0 }
 0x4f3   : > { %2219 = vmatpush3.bf16.msra.mxu1 %v2218_v46 }
 0x4f4   : > { %2220 = vmatprep.subr.bf16.mxu1 %v2567_v0 }
 0x4f7   : > { %2222 = vmatpush3.bf16.msra.mxu1 %v2221_v49 }
 0x4f8   : > { %2223 = vmatprep.subr.bf16.mxu1 %v2567_v0 }
 0x4fb   : > { %2225 = vmatpush3.bf16.msra.mxu1 %v2224_v58 }
 0x4fc   : > { %2226 = vmatprep.subr.bf16.mxu1 %v2567_v0 }
 0x4ff   : > { %2228 = vmatpush3.bf16.msra.mxu1 %v2227_v62 }
 0x500   : > { %2229 = vmatprep.subr.bf16.mxu1 %v2567_v0 }
 0x54f   : > { %v1133_v16 = vpop.f32.mrb[6].mxu0 }
 0x550   : > { %v2007_v17 = vpop.f32.mrb[7].mxu0 }
 0x5b8   : > { %v1206_v24 = vpop.f32.mrb[10].mxu1 }
 0x5b9   : > { %1357 = vrot.lane.b32.xlu1 %v1206_v24, %s2573_s20  ;;  %v2012_v25 = vpop.f32.mrb[11].mxu1  ;;  %v404_v24 = vld [vmem:[#allocation8 + $0x10] ss:$0 sm:$0xff] }
 0x5bc   : > { %v1279_v26 = vpop.f32.mrb[8].mxu0 }
 0x5bd   : > { %1361 = vrot.lane.b32.xlu0 %v1279_v26, %s2574_s11  ;;  %v2017_v27 = vpop.f32.mrb[9].mxu0 }
 0x5be   : > { %v385_v27 = vld [vmem:[#allocation7 + $0x5a0] sm:$0xff] }
 0x5c0   : > { %v1352_v28 = vpop.f32.mrb[12].mxu1 }
 0x5c1   : > { %1365 = vrot.lane.b32.xlu1 %v1352_v28, %s2575_s25  ;;  %v2022_v29 = vpop.f32.mrb[13].mxu1  ;;  %v386_v28 = vld [vmem:[#allocation7 + $0x5b0] sm:$0xff] }
 0x5c2   : > { %v2248_v29 = vpack.c.bf16 %v386_v28, %v385_v27 }
 0x62b   : > { %v1358_v30 = vpop.permute.xlu1 %1357 }
 0x62c   : > { %v1368_v32 = vsel %vm723_vm1, %v1133_v16, %v1358_v30  ;;  %v384_v16 = vld [vmem:[#allocation7 + $0x590] sm:$0xff]  ;;  %v387_v30 = vld [vmem:[#allocation7 + $0x5c0] sm:$0xff] }
 0x62d   : > { %v2245_v17 = vpack.c.bf16 %v384_v16, %v383_v15 }
 0x62f   : > { %v1362_v31 = vpop.permute.xlu0 %1361 }
 0x630   : > { %v1370_v33 = vsel %vm1369_vm2, %v1368_v32, %v1362_v31  ;;  %v388_v31 = vld [vmem:[#allocation7 + $0x5d0] sm:$0xff] }
 0x631   : > { %v2251_v32 = vpack.c.bf16 %v388_v31, %v387_v30 }
 0x633   : > { %v1366_v34 = vpop.permute.xlu1 %1365 }
 0x634   : > { %v1372_v35 = vsel %vm1371_vm3, %v1370_v33, %v1366_v34  ;;  %v389_v33 = vld [vmem:[#allocation7 + $0x5e0] sm:$0xff]  ;;  %v390_v34 = vld [vmem:[#allocation7 + $0x5f0] sm:$0xff] }
 0x635   : > { %2032 = vmatmul.mubr.msk.f32.vlgmr.msra.gmra.mrb[10].mxu0 %vm1373_vm4, %v1372_v35  ;;  %v2254_v35 = vpack.c.bf16 %v390_v34, %v389_v33 }
 0x636   : > { %2101 = vmatprep.mubr.msk.f32.mxu0 %vm2568_vm0, %v2569_v1  ;;  %2240 = vmatpush3.bf16.msra.mxu0 %v2239_v12 }
 0x637   : > { %2241 = vmatprep.subr.bf16.mxu0 %v2567_v0 }
 0x63a   : > { %2243 = vmatpush3.bf16.msra.mxu0 %v2242_v14 }
 0x63b   : > { %2244 = vmatprep.subr.bf16.mxu0 %v2567_v0 }
 0x63e   : > { %2246 = vmatpush3.bf16.msra.mxu0 %v2245_v17 }
 0x63f   : > { %2247 = vmatprep.subr.bf16.mxu0 %v2567_v0 }
 0x642   : > { %2249 = vmatpush3.bf16.msra.mxu0 %v2248_v29 }
 0x643   : > { %2250 = vmatprep.subr.bf16.mxu0 %v2567_v0 }
 0x646   : > { %2252 = vmatpush3.bf16.msra.mxu0 %v2251_v32 }
 0x647   : > { %2253 = vmatprep.subr.bf16.mxu0 %v2567_v0 }
 0x64a   : > { %2255 = vmatpush3.bf16.msra.mxu0 %v2254_v35 }
 0x64b   : > { %2256 = vmatprep.subr.bf16.mxu0 %v2567_v0 }
 0x708   : > { %v1443_v37 = vpop.f32.mrb[10].mxu0 }
 0x709   : > { %v1444_v38 = vadd.f32 %v1443_v37, %v400_v36  ;;  %v2033_v39 = vpop.f32.mrb[11].mxu0  ;;  %v391_v36 = vld [vmem:[#allocation7 + $0x600] sm:$0xff]  ;;  %v392_v37 = vld [vmem:[#allocation7 + $0x610] sm:$0xff] }
 0x70a   : > { %v393_v39 = vld [vmem:[#allocation7 + $0x620] sm:$0xff] }
 0x70b   : > { %v1447_v40 = vadd.f32 %v1444_v38, %v2864_v6  ;;  %v1449_v6 = vand.u32 127, %v618_v8  ;;  %v374_v8 = vld [vmem:[#allocation7 + $0x4f0] sm:$0xff]  ;;  %v2257_v38 = vpack.c.bf16 %v392_v37, %v391_v36 }
 0x70c   : > { %v2230_v63 = vpack.c.bf16 %v374_v8, %v373_v61 }
 0x70d   : > { %1453 = vadd.xlane.f32.xlu0 %v1447_v40  ;;  %vm1450_vm5 = vcmp.lt.s32.totalorder %v1449_v6, 32  ;;  %2258 = vmatpush3.bf16.msra.mxu0 %v2257_v38 }
 0x70e   : > { %v1767_v52 = vsel %vm1450_vm5, 1.0, %v2569_v1  ;;  %v375_v1 = vld [vmem:[#allocation7 + $0x500] sm:$0xff]  ;;  %2231 = vmatpush3.bf16.msra.mxu1 %v2230_v63  ;;  %2259 = vmatprep.subr.bf16.mxu0 %v2567_v0 }
 0x70f   : > { %v2233_v3 = vpack.c.bf16 %v376_v2, %v375_v1  ;;  %2232 = vmatprep.subr.bf16.mxu1 %v2567_v0 }
 0x712   : > { %2234 = vmatpush3.bf16.msra.mxu1 %v2233_v3 }
 0x713   : > { %2235 = vmatprep.subr.bf16.mxu1 %v2567_v0  ;;  %v402_v0 = vld [vmem:[#allocation8 + $0x6] ss:$0 sm:$0xff] }
 0x716   : > { %2237 = vmatpush3.bf16.msra.mxu1 %v2236_v7 }
 0x79a   : > { %v1454_v50 = vpop.xlane.xlu0 %1453 }
 0x79b   : > { %v1455_v51 = vmul.f32 0.03125, %v1454_v50 }
 0x79d   : > { %v1456_v53 = vsub.f32 %v1447_v40, %v1455_v51  ;;  %v394_v40 = vld [vmem:[#allocation7 + $0x630] sm:$0xff] }
 0x79e   : > { %v2260_v41 = vpack.c.bf16 %v394_v40, %v393_v39 }
 0x79f   : > { %v1457_v54 = vmul.f32 %v1767_v52, %v1456_v53 }
 0x7a0   : > { %2261 = vmatpush3.bf16.msra.mxu0 %v2260_v41 }
 0x7a1   : > { %v1458_v55 = vmul.f32 %v1457_v54, %v1457_v54 }
 0x7a3   : > { %1459 = vadd.xlane.f32.xlu1 %v1458_v55 }
 0x830   : > { %v1460_v18 = vpop.xlane.xlu1 %1459 }
 0x831   : > { %v1461_v19 = vmul.f32 0.03125, %v1460_v18 }
 0x833   : > { %v1462_v20 = vadd.f32 1e-05, %v1461_v19 }
 0x835   : > { %2361 = vrsqrt.f32 %v1462_v20 }
 0x83f   : > { %v2362_v21 = vpop.eup %2361 }
 0x840   : > { %v1464_v23 = vmul.f32 %v2362_v21, %v1457_v54 }
 0x842   : > { %v1465_v25 = vmul.f32 %v1464_v23, %v403_v22 }
 0x844   : > { %v1466_v26 = vadd.f32 %v1465_v25, %v404_v24 }
 0x846   : > { %2067 = vmatmul.mubr.f32.vlgmr.msra.gmra.mrb[14].mxu1 %v1466_v26 }
 0x919   : > { %v1533_v43 = vpop.f32.mrb[14].mxu1 }
 0x91a   : > { %v1534_v44 = vadd.f32 %v1533_v43, %v401_v42  ;;  %v2068_v45 = vpop.f32.mrb[15].mxu1 }
 0x91c   : > { %v1538_v46 = vmul.f32 0.70710677, %v1534_v44  ;;  %v1537_v48 = vmul.f32 0.5, %v1534_v44 }
 0x91e   : > { %2363 = verf.f32 %v1538_v46 }
 0x928   : > { %v2364_v47 = vpop.eup %2363 }
 0x929   : > { %v1540_v49 = vadd.f32 1.0, %v2364_v47 }
 0x92b   : > { %v1541_v6 = vmul.f32 %v1540_v49, %v1537_v48 }
 0x92d   : > { %2102 = vmatmul.mubr.f32.vlgmr.msra.gmra.mrb[12].mxu0 %v1541_v6 }
 0xa00   : > { %v1608_v50 = vpop.f32.mrb[12].mxu0 }
 0xa01   : > { %v1609_v51 = vadd.f32 %v1608_v50, %v402_v0  ;;  %v2103_v52 = vpop.f32.mrb[13].mxu0 }
 0xa03   : > { %1612 = vst [vmem:[%s278_s28] sm:$0xff] %v1609_v51 }
 0xa04   : > { %2494 = shalt.err (!%p2491_p7)
}
 0xa05   : > { %s2495_s26 = scalar_lea.hbm %s2952_s29, 128  ;;  %s2499_s12 = scalar_lea.hbm %s3000_s4, 256 }
 0xa06   : > { %p2496_p1 = scmp.ne.s32.totalorder %s2952_s29, %s2495_s26  ;;  %p2500_p0 = scmp.lt.u32.totalorder %s2952_s29, %s3000_s4 }
 0xa07   : > { %p2501_p9 = scmp.lt.u32.totalorder %s2499_s12, %s2495_s26  ;;  %p2503_p2 = scmp.lt.u32.totalorder %s2495_s26, %s2952_s29 }
 0xa08   : > { %p2497_p8 = pnand %p2496_p1, %p3020_p13 }
 0xa09   : > { %p2502_p12 = por %p2501_p9, %p2500_p0 }
 0xa0a   : > { %p2498_p11 = pneg %p2497_p8 }
 0xa0b   : > { %p2504_p6 = por %p2503_p2, %p2502_p12 }
 0xa0d   : > { %p2505_p10 = pnand %p2504_p6, %p2498_p11 }
 0xa0f   : > { %2508 = shalt.err (!%p2505_p10)
}
 0xa10   : > { %2274 = dma.vmem_to_hbm [thread:$0]  (%p3020_p13), %s2954_s27, 128, %s2952_s29, %s1614_s6  }
 0xa11 PF: > { %s1639_s11 = sand.u32 1, %s2547_s15   ;;  %p3021_p4 = scmp.ne.s32.totalorder %s3007_s22, 0 }
 0xa12   : > { %p3022_p5 = scmp.ge.s32.totalorder %s2559_s18, 2  ;;  %s1640_s25 = scalar_lea.sflag [#allocation4], %s1639_s11 }
 0xa14   : > { %p2291_p3 = pnand %p3022_p5, %p3021_p4 }
 0xa16   : > { %2542 = dma.done.wait (!%p2291_p3), %s1640_s25, 128  }
 0xa17   : > { %2544 = vsyncadd (!%p2291_p3), %s1640_s25, 4294967168  ;;  %p21_p7 = scmp.ge.s32.totalorder %s2712_s9, 4   ;;  %s3023_s15 = smov %s2551_s16 }
 0xa18   : > { %s3024_s16 = smov %s2555_s17  ;;  %s3025_s17 = smov %s2728_s14 }
 0xa19   : > { %s3026_s18 = smov %s2712_s9  ;;  %23 = sbr.rel (!%p21_p7) target bundleno = 10 (0xa), region = 103 }
 0xa20   :  { %1645 = vsyncpa [#allocation3], 1 }
 0xa21   :  { %1647 = vsyncpa [#allocation3 + $0x1], 1 }
 0xa22   :  { %1648 = vsyncpa [#allocation6], 1 }
 0xa23   :  { %1650 = vsyncpa [#allocation6 + $0x1], 1 }
 0xa24   :  { %1651 = vsyncpa [#allocation9], 1 }
 0xa25   :  { %1652 = vsyncpa [#allocation4], 1 }
 0xa26   :  { %1654 = vsyncpa [#allocation4 + $0x1], 1 }

// kernel: tpu_custom_call.1
= control target key start
LH: loop header
LB: loop body
LE: loop exit
PB: predicated region body
PF: predicated region fallthrough
CT: control target
= control target key end

     0   :  { %s2996_s0 = inlined_call_operand.hbm [shape: f32[16,128], index: 0, kind: input, shape index: {}]   ;;  %s2997_s1 = inlined_call_operand.hbm [shape: f32[16,128], index: 1, kind: input, shape index: {}]   ;;  %s2998_s2 = inlined_call_operand.hbm [shape: f32[800,256], index: 2, kind: input, shape index: {}]   ;;  %s2999_s3 = inlined_call_operand.hbm [shape: f32[9,256], index: 3, kind: input, shape index: {}]   ;;  %s3000_s4 = inlined_call_operand.hbm [shape: f32[16,128], index: 4, kind: output, shape index: {}]  }
   0x1   :  { %3005 = sst [smem:[#allocation16_spill]] %s2998_s2 }
   0x2   :  { %9 = vsyncpa [#allocation3], 0 }
   0x3   :  { %11 = vsyncpa [#allocation3 + $0x1], 0 }
   0x4   :  { %12 = vsyncpa [#allocation6], 0 }
   0x5   :  { %14 = vsyncpa [#allocation6 + $0x1], 0 }
   0x6   :  { %15 = vsyncpa [#allocation9], 0 }
   0x7   :  { %16 = vsyncpa [#allocation4], 0 }
   0x8   :  { %18 = vsyncpa [#allocation4 + $0x1], 0  ;;  %s2602_s15 = smov 0   ;;  %s2604_s16 = smov 0  }
   0x9   :  { %s2606_s17 = smov 0   ;;  %s2608_s18 = smov 0  }
   0xa LB: > { %s2623_s19 = sadd.s32 4294967295, %s2559_s18   ;;  %s1739_s20 = sadd.s32 4294967294, %s2559_s18   ;;  %s2559_s18 = sphi %s2608_s18, %s3026_s18   ;;  %s2555_s17 = sphi %s2606_s17, %s3025_s17   ;;  %s2551_s16 = sphi %s2604_s16, %s3024_s16   ;;  %s2547_s15 = sphi %s2602_s15, %s3023_s15  }
   0xb   : > { %p44_p0 = scmp.ne.s32.totalorder %s2551_s16, %s2547_s15  ;;  %p3001_p1 = scmp.eq.s32.totalorder %s2623_s19, 0 }
   0xc   : > { %p142_p3 = scmp.eq.s32.totalorder %s1739_s20, 1  ;;  %p1740_p5 = scmp.ge.s32.totalorder %s2559_s18, 1 }
   0xd   : > { %p2632_p4 = por %p3001_p1, %p44_p0  ;;  %p149_p7 = scmp.lt.s32.totalorder %s2559_s18, 3 }
   0xe   : > { %p2637_p6 = por %p142_p3, %p44_p0  ;;  %s2561_s24 = smov [#allocation7]  }
   0xf   : > { %s3006_s21 = scalar_select %p2632_p4, 1, 0 }
  0x10   : > { %s3007_s22 = scalar_select %p2637_p6, 1, 0 }
  0x11   : > { %p2642_p8 = pnand %p1740_p5, %p149_p7  ;;  %s161_s25 = sshll.u32 %s2561_s24, 4  ;;  %s2646_s25 = int_to_ptr.vmem [resolvable:$true] %s161_s25 }
  0x12   : > { %s2562_s27 = smov [#allocation8]   ;;  %s3010_s2 = sld [smem:[#allocation16_spill]] }
  0x13   : > { %s3008_s23 = scalar_select %p2642_p8, 1, 0 }
  0x14   : > { %p2276_p9 = pneg %p2642_p8  ;;  %s174_s28 = sshll.u32 %s2562_s27, 4  ;;  %s2657_s28 = int_to_ptr.vmem [resolvable:$true] %s174_s28 }
  0x16   : > { %p2653_p11 = pnand %p2276_p9, %p3001_p1 }
  0x18   : > { %s2365_s5 = scalar_lea.hbm %s3010_s2, 25600  ;;  %p2367_p13 = pneg %p2653_p11 }
  0x19   : > { %p2366_p12 = scmp.ne.s32.totalorder %s3010_s2, %s2365_s5  ;;  %p2372_p5 = scmp.lt.u32.totalorder %s2365_s5, %s3010_s2 }
  0x1b   : > { %p2368_p0 = pnand %p2367_p13, %p2366_p12 }
  0x1d   : > { %p2369_p3 = pneg %p2368_p0 }
  0x1f   : > { %p2374_p7 = pnand %p2372_p5, %p2369_p3 }
  0x21   : > { %2377 = shalt.err (!%p2374_p7)
}
  0x22   : > { %s2378_s10 = scalar_lea.vmem %s2646_s25, 25600  ;;  %p2386_p2 = scmp.lt.s32.totalorder %s2646_s25, %s2646_s25 }
  0x23   : > { %p2379_p9 = scmp.ne.s32.totalorder %s2646_s25, %s2378_s10  ;;  %p2387_p12 = scmp.lt.s32.totalorder %s2378_s10, %s2378_s10 }
  0x25   : > { %p2381_p10 = pnand %p2379_p9, %p2367_p13  ;;  %p2388_p0 = por %p2387_p12, %p2386_p2 }
  0x27   : > { %p2382_p1 = pneg %p2381_p10 }
  0x29   : > { %p2389_p6 = pnand %p2388_p0, %p2382_p1 }
  0x2b   : > { %2392 = shalt.err (!%p2389_p6)
}
  0x2c   : > { %s2563_s11 = smov 256   ;;  %s2564_s12 = smov 16  }
  0x2d   : > { %2279 = dma.hbm_to_vmem [thread:$0]  (!%p2653_p11), %s3010_s2, 25600, %s2646_s25, [#allocation6], %s2563_s11, %s2563_s11, %s2564_s12  }
  0x2e   : > { %s2393_s27 = scalar_lea.hbm %s2999_s3, 512 }
  0x2f   : > { %p2394_p2 = scmp.ne.s32.totalorder %s2999_s3, %s2393_s27  ;;  %p2400_p10 = scmp.lt.u32.totalorder %s2393_s27, %s2999_s3 }
  0x31   : > { %p2396_p1 = pnand %p2394_p2, %p2367_p13 }
  0x33   : > { %p2397_p6 = pneg %p2396_p1 }
  0x35   : > { %p2402_p3 = pnand %p2400_p10, %p2397_p6 }
  0x37   : > { %2405 = shalt.err (!%p2402_p3)
}
  0x38   : > { %s2406_s25 = scalar_lea.vmem %s2657_s28, 512  ;;  %p2414_p12 = scmp.lt.s32.totalorder %s2657_s28, %s2657_s28 }
  0x39   : > { %p2407_p5 = scmp.ne.s32.totalorder %s2657_s28, %s2406_s25  ;;  %p2415_p0 = scmp.lt.s32.totalorder %s2406_s25, %s2406_s25 }
  0x3b   : > { %p2409_p7 = pnand %p2407_p5, %p2367_p13  ;;  %p2416_p2 = por %p2415_p0, %p2414_p12 }
  0x3d   : > { %p2410_p9 = pneg %p2409_p7 }
  0x3f   : > { %p2417_p1 = pnand %p2416_p2, %p2410_p9 }
  0x41   : > { %2420 = shalt.err (!%p2417_p1)
}
  0x42   : > { %2282 = dma.hbm_to_vmem [thread:$0]  (!%p2653_p11), %s2999_s3, 512, %s2657_s28, [#allocation9], %s2563_s11, %s2563_s11, %s2564_s12  }
  0x43   : > { %s2712_s9 = sadd.s32 1, %s2559_s18   ;;  %s31_s26 = sadd.s32 1, %s2555_s17 }
  0x44   : > { %s28_s10 = ssub.s32 %s2559_s18, %s2712_s9  ;;  %p38_p13 = scmp.ne.s32.totalorder %s2555_s17, %s2551_s16 }
  0x45   : > { %p29_p6 = scmp.eq.s32.totalorder %s28_s10, 0  ;;  %p39_p10 = scmp.eq.s32.totalorder %s2559_s18, 0 }
  0x46   : > { %p3011_p3 = scmp.eq.s32.totalorder %s2623_s19, 1  ;;  %p2296_p7 = scmp.lt.s32.totalorder %s2559_s18, 2 }
  0x47   : > { %s2728_s14 = scalar_select %p29_p6, %s2555_s17, %s31_s26  }
  0x48   : > { %p2722_p5 = por %p3011_p3, %p38_p13  ;;  %p40_p9 = por %p39_p10, %p38_p13 }
  0x49   : > { %s188_s20 = sand.u32 1, %s2555_s17   ;;  %s1745_s11 = sshll.u32 %s2559_s18, 7 }
  0x4a   : > { %s3012_s13 = scalar_select %p2722_p5, 1, 0 }
  0x4b   : > { %s2731_s28 = sshll.u32 %s188_s20, 3  ;;  %s2737_s27 = scalar_lea.hbm %s2996_s0, %s1745_s11 }
  0x4c   : > { %s192_s29 = scalar_lea.vmem [#allocation2], %s2731_s28  ;;  %p2742_p11 = pnand %p2296_p7, %p40_p9 }
  0x4d   : > { %s199_s30 = sshll.u32 %s192_s29, 4  ;;  %s2749_s7 = scalar_lea.hbm %s2997_s1, %s1745_s11  ;;  %s2740_s30 = int_to_ptr.vmem [resolvable:$true] %s199_s30 }
  0x4e   : > { %s206_s8 = sand.u32 1, %s2559_s18   ;;  %s189_s26 = scalar_lea.sflag [#allocation3], %s188_s20 }
  0x4f   : > { %s2421_s10 = scalar_lea.hbm %s2737_s27, 128  ;;  %p2423_p0 = pneg %p2742_p11 }
  0x50   : > { %p2422_p12 = scmp.ne.s32.totalorder %s2737_s27, %s2421_s10  ;;  %s2426_s29 = scalar_lea.hbm %s2996_s0, 256 }
  0x51   : > { %p2427_p13 = scmp.lt.u32.totalorder %s2737_s27, %s2996_s0  ;;  %p2428_p6 = scmp.lt.u32.totalorder %s2426_s29, %s2421_s10 }
  0x52   : > { %p2424_p2 = pnand %p2423_p0, %p2422_p12  ;;  %p2430_p3 = scmp.lt.u32.totalorder %s2421_s10, %s2737_s27 }
  0x53   : > { %p2429_p10 = por %p2428_p6, %p2427_p13 }
  0x54   : > { %p2425_p1 = pneg %p2424_p2 }
  0x55   : > { %p2431_p7 = por %p2430_p3, %p2429_p10 }
  0x57   : > { %p2432_p9 = pnand %p2431_p7, %p2425_p1 }
  0x59   : > { %2435 = shalt.err (!%p2432_p9)
}
  0x5a   : > { %s2436_s20 = scalar_lea.vmem %s2740_s30, 128  ;;  %s2565_s11 = smov [#allocation2]  }
  0x5b   : > { %p2437_p12 = scmp.ne.s32.totalorder %s2740_s30, %s2436_s20  ;;  %s2441_s25 = sshll.u32 %s2565_s11, 4  ;;  %s2442_s25 = int_to_ptr.vmem [resolvable:$false] %s2441_s25 }
  0x5c   : > { %s2443_s2 = scalar_lea.vmem %s2442_s25, 256  ;;  %p2444_p4 = scmp.lt.s32.totalorder %s2740_s30, %s2442_s25 }
  0x5d   : > { %p2439_p2 = pnand %p2437_p12, %p2423_p0  ;;  %p2445_p13 = scmp.lt.s32.totalorder %s2443_s2, %s2436_s20 }
  0x5f   : > { %p2440_p5 = pneg %p2439_p2  ;;  %p2446_p6 = por %p2445_p13, %p2444_p4 }
  0x61   : > { %p2447_p10 = pnand %p2446_p6, %p2440_p5 }
  0x63   : > { %2450 = shalt.err (!%p2447_p10)
}
  0x64   : > { %2286 = dma.hbm_to_vmem [thread:$0]  (!%p2742_p11), %s2737_s27, 128, %s2740_s30, %s189_s26  }
  0x65   : > { %s210_s10 = scalar_lea.vmem [#allocation5], %s2731_s28  ;;  %s207_s24 = scalar_lea.sflag [#allocation6], %s206_s8 }
  0x66   : > { %s217_s12 = sshll.u32 %s210_s10, 4  ;;  %s2451_s29 = scalar_lea.hbm %s2749_s7, 128  ;;  %s218_s12 = int_to_ptr.vmem [resolvable:$true] %s217_s12 }
  0x67   : > { %p2452_p4 = scmp.ne.s32.totalorder %s2749_s7, %s2451_s29  ;;  %s2456_s11 = scalar_lea.hbm %s2997_s1, 256 }
  0x68   : > { %p2457_p3 = scmp.lt.u32.totalorder %s2749_s7, %s2997_s1  ;;  %p2458_p7 = scmp.lt.u32.totalorder %s2456_s11, %s2451_s29 }
  0x69   : > { %p2454_p5 = pnand %p2452_p4, %p2423_p0  ;;  %p2460_p12 = scmp.lt.u32.totalorder %s2451_s29, %s2749_s7 }
  0x6a   : > { %p2459_p9 = por %p2458_p7, %p2457_p3 }
  0x6b   : > { %p2455_p1 = pneg %p2454_p5 }
  0x6c   : > { %p2461_p2 = por %p2460_p12, %p2459_p9 }
  0x6e   : > { %p2462_p13 = pnand %p2461_p2, %p2455_p1 }
  0x70   : > { %2465 = shalt.err (!%p2462_p13)
}
  0x71   : > { %s2466_s28 = scalar_lea.vmem %s218_s12, 128  ;;  %s2566_s27 = smov [#allocation5]  }
  0x72   : > { %p2467_p6 = scmp.ne.s32.totalorder %s218_s12, %s2466_s28  ;;  %s2471_s30 = sshll.u32 %s2566_s27, 4  ;;  %s2472_s30 = int_to_ptr.vmem [resolvable:$false] %s2471_s30 }
  0x73   : > { %s2473_s8 = scalar_lea.vmem %s2472_s30, 256  ;;  %p2474_p5 = scmp.lt.s32.totalorder %s218_s12, %s2472_s30 }
  0x74   : > { %p2469_p10 = pnand %p2467_p6, %p2423_p0  ;;  %p2475_p8 = scmp.lt.s32.totalorder %s2473_s8, %s2466_s28 }
  0x76   : > { %p2470_p4 = pneg %p2469_p10  ;;  %p2476_p3 = por %p2475_p8, %p2474_p5 }
  0x78   : > { %p2477_p7 = pnand %p2476_p3, %p2470_p4 }
  0x7a   : > { %2480 = shalt.err (!%p2477_p7)
}
  0x7b   : > { %2289 = dma.hbm_to_vmem [thread:$0]  (!%p2742_p11), %s2749_s7, 128, %s218_s12, %s207_s24  }
  0x7c   : > { %p3014_p1 = scmp.ne.s32.totalorder %s3008_s23, 0 }
  0x7d   : > { %s2802_s26 = sand.u32 (!%p3014_p1), 1, %s2551_s16   ;;  %p3015_p8 = scmp.ne.s32.totalorder (!%p3014_p1), %s3006_s21, 0 }
  0x7e   : > { %226 = sbr.rel (%p3014_p1) target bundleno = 2577 (0xa11), region = 36  ;;  %s2805_s10 = sshll.u32 (!%p3014_p1), %s2802_s26, 3 }
  0x7f   : > { %s229_s29 = scalar_lea.sflag (!%p3014_p1), [#allocation3], %s2802_s26  ;;  %s232_s6 = scalar_lea.vmem (!%p3014_p1), [#allocation2], %s2805_s10 }
  0x85   : > { %2526 = dma.done.wait (%p3015_p8), %s229_s29, 128  }
  0x86   : > { %2528 = vsyncadd (%p3015_p8), %s229_s29, 4294967168  ;;  %s237_s23 = sand.u32 1, %s2623_s19   ;;  %s241_s7 = scalar_lea.vmem [#allocation5], %s2805_s10 }
  0x87   : > { %s238_s5 = scalar_lea.sflag [#allocation6], %s237_s23 }
  0x88   : > { %2530 = dma.done.wait (%p3015_p8), %s238_s5, 128  }
  0x89   : > { %2532 = vsyncadd (%p3015_p8), %s238_s5, 4294967168  ;;  %p3016_p11 = scmp.eq.s32.totalorder %s2623_s19, 0 }
  0x8b   : > { %2534 = dma.done.wait (%p3016_p11), [#allocation6], 25600   ;;  %p3017_p0 = pmov %p3016_p11 }
  0x8d   : > { %2536 = vsyncadd (%p3017_p0), [#allocation6], 4294941696  ;;  %p3018_p9 = pmov %p3017_p0 }
  0x8e   : > { %p3019_p12 = pmov %p3017_p0 }
  0x8f   : > { %2538 = dma.done.wait (%p3018_p9), [#allocation9], 512  }
  0x90   : > { %2540 = vsyncadd (%p3019_p12), [#allocation9], 4294966784  ;;  %v2567_v0 = vmov 0.0|0.0   ;;  %vm2568_vm0 = vmmov 0   ;;  %v2569_v1 = vmov 0.0   ;;  %v295_v2 = vld [vmem:[#allocation7 + $0x100] sm:$0xff] }
  0x91   : > { %2128 = vmatprep.subr.bf16.mxu1 %v2567_v0  ;;  %2104 = vmatprep.subr.bf16.mxu0 %v2567_v0  ;;  %v296_v3 = vld [vmem:[#allocation7 + $0x110] sm:$0xff]  ;;  %v279_v4 = vld [vmem:[#allocation7] sm:$0xff]  ;;  %v328_v48 = vld [vmem:[#allocation7 + $0x308] sm:$0xff]  ;;  %vm723_vm1 = vcmask 64512   ;;  %s2570_s21 = smov 112   ;;  %s2571_s12 = smov 120  }
  0x92   : > { %1945 = vmatprep.mubr.msk.f32.mxu1 %vm2568_vm0, %v2569_v1  ;;  %1910 = vmatprep.mubr.msk.f32.mxu0 %vm2568_vm0, %v2569_v1  ;;  %v2129_v5 = vpack.c.bf16 %v296_v3, %v295_v2  ;;  %v280_v6 = vld [vmem:[#allocation7 + $0x10] sm:$0xff]  ;;  %v297_v7 = vld [vmem:[#allocation7 + $0x120] sm:$0xff]  ;;  %v330_v49 = vld [vmem:[#allocation7 + $0x318] sm:$0xff]  ;;  %s2572_s24 = smov 104   ;;  %s2573_s20 = smov 8   ;;  %vm1369_vm2 = vcmask 130048  }
  0x93   : > { %v298_v8 = vld [vmem:[#allocation7 + $0x130] sm:$0xff]  ;;  %v2105_v9 = vpack.c.bf16 %v280_v6, %v279_v4  ;;  %v281_v10 = vld [vmem:[#allocation7 + $0x20] sm:$0xff]  ;;  %v2176_v52 = vpack.c.bf16 %v330_v49, %v328_v48  ;;  %v332_v57 = vld [vmem:[#allocation7 + $0x328] sm:$0xff]  ;;  %s2574_s11 = smov 16   ;;  %s2575_s25 = smov 24   ;;  %vm1371_vm3 = vcmask 195584  }
  0x94   : > { %v282_v11 = vld [vmem:[#allocation7 + $0x30] sm:$0xff]  ;;  %2130 = vmatpush3.bf16.msra.mxu1 %v2129_v5  ;;  %v2132_v12 = vpack.c.bf16 %v298_v8, %v297_v7  ;;  %v299_v14 = vld [vmem:[#allocation7 + $0x140] sm:$0xff]  ;;  %v334_v58 = vld [vmem:[#allocation7 + $0x338] sm:$0xff]  ;;  %vm1373_vm4 = vcmask 261120   ;;  %s1769_s2 = sshll.u32 %s2623_s19, 7  ;;  %s278_s28 = scalar_lea.vmem [#allocation10], %s2805_s10 }
  0x95   : > { %2106 = vmatpush3.bf16.msra.mxu0 %v2105_v9  ;;  %2131 = vmatprep.subr.bf16.mxu1 %v2567_v0  ;;  %v2108_v13 = vpack.c.bf16 %v282_v11, %v281_v10  ;;  %v300_v15 = vld [vmem:[#allocation7 + $0x150] sm:$0xff]  ;;  %v283_v16 = vld [vmem:[#allocation7 + $0x40] sm:$0xff]  ;;  %v2180_v63 = vpack.c.bf16 %v334_v58, %v332_v57  ;;  %v336_v6 = vld [vmem:[#allocation7 + $0x348] sm:$0xff]  ;;  %s1627_s27 = sshll.u32 %s278_s28, 4  ;;  %s2952_s29 = scalar_lea.hbm %s3000_s4, %s1769_s2  ;;  %s2954_s27 = int_to_ptr.vmem [resolvable:$true] %s1627_s27 }
  0x96   : > { %2107 = vmatprep.subr.bf16.mxu0 %v2567_v0  ;;  %v284_v17 = vld [vmem:[#allocation7 + $0x50] sm:$0xff]  ;;  %v2135_v18 = vpack.c.bf16 %v300_v15, %v299_v14  ;;  %v301_v20 = vld [vmem:[#allocation7 + $0x160] sm:$0xff]  ;;  %v338_v7 = vld [vmem:[#allocation7 + $0x358] sm:$0xff]  ;;  %s2481_s23 = scalar_lea.vmem %s2954_s27, 128  ;;  %p3020_p13 = scmp.ne.s32.totalorder %s3012_s13, 0 }
  0x97   : > { %v2111_v19 = vpack.c.bf16 %v284_v17, %v283_v16  ;;  %v302_v21 = vld [vmem:[#allocation7 + $0x170] sm:$0xff]  ;;  %v285_v22 = vld [vmem:[#allocation7 + $0x60] sm:$0xff]  ;;  %v2184_v10 = vpack.c.bf16 %v338_v7, %v336_v6  ;;  %v340_v15 = vld [vmem:[#allocation7 + $0x368] sm:$0xff]  ;;  %p2482_p2 = scmp.ne.s32.totalorder %s2954_s27, %s2481_s23  ;;  %s2576_s19 = smov [#allocation10]  }
  0x98   : > { %2133 = vmatpush3.bf16.msra.mxu1 %v2132_v12  ;;  %v286_v23 = vld [vmem:[#allocation7 + $0x70] sm:$0xff]  ;;  %v2138_v24 = vpack.c.bf16 %v302_v21, %v301_v20  ;;  %v303_v26 = vld [vmem:[#allocation7 + $0x180] sm:$0xff]  ;;  %v342_v16 = vld [vmem:[#allocation7 + $0x378] sm:$0xff]  ;;  %s2485_s10 = sshll.u32 %s2576_s19, 4  ;;  %s2486_s10 = int_to_ptr.vmem [resolvable:$false] %s2485_s10 }
  0x99   : > { %2109 = vmatpush3.bf16.msra.mxu0 %v2108_v13  ;;  %2134 = vmatprep.subr.bf16.mxu1 %v2567_v0  ;;  %v2114_v25 = vpack.c.bf16 %v286_v23, %v285_v22  ;;  %v304_v27 = vld [vmem:[#allocation7 + $0x190] sm:$0xff]  ;;  %v287_v28 = vld [vmem:[#allocation7 + $0x80] sm:$0xff]  ;;  %p2483_p6 = pnand %p2482_p2, %p3020_p13  ;;  %s2487_s5 = scalar_lea.vmem %s2486_s10, 256 }
  0x9a   : > { %2110 = vmatprep.subr.bf16.mxu0 %v2567_v0  ;;  %v288_v29 = vld [vmem:[#allocation7 + $0x90] sm:$0xff]  ;;  %v2141_v30 = vpack.c.bf16 %v304_v27, %v303_v26  ;;  %v305_v32 = vld [vmem:[#allocation7 + $0x1a0] sm:$0xff]  ;;  %p2488_p4 = scmp.lt.s32.totalorder %s2954_s27, %s2486_s10  ;;  %p2489_p5 = scmp.lt.s32.totalorder %s2487_s5, %s2481_s23 }
  0x9b   : > { %v2117_v31 = vpack.c.bf16 %v288_v29, %v287_v28  ;;  %v306_v33 = vld [vmem:[#allocation7 + $0x1b0] sm:$0xff]  ;;  %v289_v34 = vld [vmem:[#allocation7 + $0xa0] sm:$0xff]  ;;  %p2484_p10 = pneg %p2483_p6 }
  0x9c   : > { %2136 = vmatpush3.bf16.msra.mxu1 %v2135_v18  ;;  %v290_v35 = vld [vmem:[#allocation7 + $0xb0] sm:$0xff]  ;;  %v2144_v36 = vpack.c.bf16 %v306_v33, %v305_v32  ;;  %v307_v38 = vld [vmem:[#allocation7 + $0x1c0] sm:$0xff]  ;;  %v348_v33 = vld [vmem:[#allocation7 + $0x3a8] sm:$0xff]  ;;  %p2490_p3 = por %p2489_p5, %p2488_p4 }
  0x9d   : > { %2112 = vmatpush3.bf16.msra.mxu0 %v2111_v19  ;;  %2137 = vmatprep.subr.bf16.mxu1 %v2567_v0  ;;  %v2120_v37 = vpack.c.bf16 %v290_v35, %v289_v34  ;;  %v308_v39 = vld [vmem:[#allocation7 + $0x1d0] sm:$0xff]  ;;  %v291_v40 = vld [vmem:[#allocation7 + $0xc0] sm:$0xff]  ;;  %v2188_v19 = vpack.c.bf16 %v342_v16, %v340_v15  ;;  %v350_v34 = vld [vmem:[#allocation7 + $0x3b8] sm:$0xff] }
  0x9e   : > { %2113 = vmatprep.subr.bf16.mxu0 %v2567_v0  ;;  %v292_v41 = vld [vmem:[#allocation7 + $0xd0] sm:$0xff]  ;;  %v2147_v42 = vpack.c.bf16 %v308_v39, %v307_v38  ;;  %v309_v44 = vld [vmem:[#allocation7 + $0x1e0] sm:$0xff]  ;;  %p2491_p7 = pnand %p2490_p3, %p2484_p10 }
  0x9f   : > { %v2123_v43 = vpack.c.bf16 %v292_v41, %v291_v40  ;;  %v310_v45 = vld [vmem:[#allocation7 + $0x1f0] sm:$0xff]  ;;  %v293_v46 = vld [vmem:[#allocation7 + $0xe0] sm:$0xff] }
  0xa0   : > { %2139 = vmatpush3.bf16.msra.mxu1 %v2138_v24  ;;  %v294_v47 = vld [vmem:[#allocation7 + $0xf0] sm:$0xff]  ;;  %v2150_v50 = vpack.c.bf16 %v310_v45, %v309_v44  ;;  %v327_v53 = vld [vmem:[#allocation7 + $0x300] sm:$0xff]  ;;  %v344_v24 = vld [vmem:[#allocation7 + $0x388] sm:$0xff] }
  0xa1   : > { %2115 = vmatpush3.bf16.msra.mxu0 %v2114_v25  ;;  %2140 = vmatprep.subr.bf16.mxu1 %v2567_v0  ;;  %v2126_v51 = vpack.c.bf16 %v294_v47, %v293_v46  ;;  %v329_v54 = vld [vmem:[#allocation7 + $0x310] sm:$0xff]  ;;  %v311_v55 = vld [vmem:[#allocation7 + $0x200] sm:$0xff]  ;;  %v346_v25 = vld [vmem:[#allocation7 + $0x398] sm:$0xff] }
  0xa2   : > { %2116 = vmatprep.subr.bf16.mxu0 %v2567_v0  ;;  %v312_v56 = vld [vmem:[#allocation7 + $0x210] sm:$0xff]  ;;  %v405_v60 = vld [vmem:[%s232_s6] sm:$0xff]  ;;  %v2178_v61 = vpack.c.bf16 %v329_v54, %v327_v53  ;;  %v2192_v28 = vpack.c.bf16 %v346_v25, %v344_v24  ;;  %s1614_s6 = scalar_lea.sflag [#allocation4], %s2802_s26 }
  0xa3   : > { %v476_v59 = vld [vmem:[%s241_s7] sm:$0xff]  ;;  %v2153_v62 = vpack.c.bf16 %v312_v56, %v311_v55  ;;  %v331_v2 = vld [vmem:[#allocation7 + $0x320] sm:$0xff] }
  0xa4   : > { %2142 = vmatpush3.bf16.msra.mxu1 %v2141_v30  ;;  %v333_v3 = vld [vmem:[#allocation7 + $0x330] sm:$0xff]  ;;  %v313_v4 = vld [vmem:[#allocation7 + $0x220] sm:$0xff] }
  0xa5   : > { %2118 = vmatpush3.bf16.msra.mxu0 %v2117_v31  ;;  %2143 = vmatprep.subr.bf16.mxu1 %v2567_v0  ;;  %v314_v5 = vld [vmem:[#allocation7 + $0x230] sm:$0xff]  ;;  %v2182_v8 = vpack.c.bf16 %v333_v3, %v331_v2  ;;  %v335_v11 = vld [vmem:[#allocation7 + $0x340] sm:$0xff] }
  0xa6   : > { %2119 = vmatprep.subr.bf16.mxu0 %v2567_v0  ;;  %v2156_v9 = vpack.c.bf16 %v314_v5, %v313_v4  ;;  %v337_v12 = vld [vmem:[#allocation7 + $0x350] sm:$0xff]  ;;  %v315_v13 = vld [vmem:[#allocation7 + $0x240] sm:$0xff] }
  0xa7   : > { %v316_v14 = vld [vmem:[#allocation7 + $0x250] sm:$0xff]  ;;  %v2186_v17 = vpack.c.bf16 %v337_v12, %v335_v11  ;;  %v339_v20 = vld [vmem:[#allocation7 + $0x360] sm:$0xff] }
  0xa8   : > { %2145 = vmatpush3.bf16.msra.mxu1 %v2144_v36  ;;  %v2159_v18 = vpack.c.bf16 %v316_v14, %v315_v13  ;;  %v341_v21 = vld [vmem:[#allocation7 + $0x370] sm:$0xff]  ;;  %v317_v22 = vld [vmem:[#allocation7 + $0x260] sm:$0xff] }
  0xa9   : > { %2121 = vmatpush3.bf16.msra.mxu0 %v2120_v37  ;;  %2146 = vmatprep.subr.bf16.mxu1 %v2567_v0  ;;  %v318_v23 = vld [vmem:[#allocation7 + $0x270] sm:$0xff]  ;;  %v2190_v26 = vpack.c.bf16 %v341_v21, %v339_v20  ;;  %v343_v29 = vld [vmem:[#allocation7 + $0x380] sm:$0xff]  ;;  %v2196_v37 = vpack.c.bf16 %v350_v34, %v348_v33 }
  0xaa   : > { %2122 = vmatprep.subr.bf16.mxu0 %v2567_v0  ;;  %v2162_v27 = vpack.c.bf16 %v318_v23, %v317_v22  ;;  %v345_v30 = vld [vmem:[#allocation7 + $0x390] sm:$0xff]  ;;  %v319_v31 = vld [vmem:[#allocation7 + $0x280] sm:$0xff] }
  0xab   : > { %v320_v32 = vld [vmem:[#allocation7 + $0x290] sm:$0xff]  ;;  %v2194_v35 = vpack.c.bf16 %v345_v30, %v343_v29  ;;  %v347_v38 = vld [vmem:[#allocation7 + $0x3a0] sm:$0xff] }
  0xac   : > { %2148 = vmatpush3.bf16.msra.mxu1 %v2147_v42  ;;  %v2165_v36 = vpack.c.bf16 %v320_v32, %v319_v31  ;;  %v349_v39 = vld [vmem:[#allocation7 + $0x3b0] sm:$0xff]  ;;  %v321_v40 = vld [vmem:[#allocation7 + $0x2a0] sm:$0xff]  ;;  %v352_v42 = vld [vmem:[#allocation7 + $0x3c8] sm:$0xff] }
  0xad   : > { %2124 = vmatpush3.bf16.msra.mxu0 %v2123_v43  ;;  %2149 = vmatprep.subr.bf16.mxu1 %v2567_v0  ;;  %v322_v41 = vld [vmem:[#allocation7 + $0x2b0] sm:$0xff]  ;;  %v354_v43 = vld [vmem:[#allocation7 + $0x3d8] sm:$0xff]  ;;  %v2198_v44 = vpack.c.bf16 %v349_v39, %v347_v38  ;;  %v351_v47 = vld [vmem:[#allocation7 + $0x3c0] sm:$0xff] }
  0xae   : > { %2125 = vmatprep.subr.bf16.mxu0 %v2567_v0  ;;  %v2168_v45 = vpack.c.bf16 %v322_v41, %v321_v40  ;;  %v2200_v46 = vpack.c.bf16 %v354_v43, %v352_v42  ;;  %v353_v48 = vld [vmem:[#allocation7 + $0x3d0] sm:$0xff]  ;;  %v323_v49 = vld [vmem:[#allocation7 + $0x2c0] sm:$0xff] }
  0xaf   : > { %v2202_v53 = vpack.c.bf16 %v353_v48, %v351_v47  ;;  %v355_v56 = vld [vmem:[#allocation7 + $0x3e0] sm:$0xff]  ;;  %v357_v57 = vld [vmem:[#allocation7 + $0x3f0] sm:$0xff] }
  0xb0   : > { %2151 = vmatpush3.bf16.msra.mxu1 %v2150_v50  ;;  %v324_v50 = vld [vmem:[#allocation7 + $0x2d0] sm:$0xff]  ;;  %v2206_v58 = vpack.c.bf16 %v357_v57, %v355_v56  ;;  %v399_v11 = vld [vmem:[#allocation8 + $0x3] ss:$8 sm:$0x3]  ;;  %v397_v14 = vld [vmem:[#allocation8 + $0x2] ss:$0 sm:$0xff] }
  0xb1   : > { %2127 = vmatpush3.bf16.msra.mxu0 %v2126_v51  ;;  %2177 = vmatprep.subr.bf16.mxu1 %v2176_v52  ;;  %v356_v51 = vld [vmem:[#allocation7 + $0x3e8] sm:$0xff]  ;;  %v358_v52 = vld [vmem:[#allocation7 + $0x3f8] sm:$0xff]  ;;  %v2171_v54 = vpack.c.bf16 %v324_v50, %v323_v49 }
  0xb2   : > { %2152 = vmatprep.subr.bf16.mxu0 %v2567_v0  ;;  %v2204_v55 = vpack.c.bf16 %v358_v52, %v356_v51 }
  0xb3   : > { %1946 = vmatmul.mubr.f32.vlgmr.msra.gmra.mrb[0].mxu1 %v476_v59  ;;  %v325_v59 = vld [vmem:[#allocation7 + $0x2e0] sm:$0xff] }
  0xb4   : > { %1911 = vmatmul.mubr.f32.vlgmr.msra.gmra.mrb[0].mxu0 %v405_v60  ;;  %2179 = vmatpush1.bf16.msra.mxu1 %v2178_v61  ;;  %v326_v60 = vld [vmem:[#allocation7 + $0x2f0] sm:$0xff] }
  0xb5   : > { %2154 = vmatpush3.bf16.msra.mxu0 %v2153_v62  ;;  %2181 = vmatprep.subr.bf16.mxu1 %v2180_v63  ;;  %v2174_v61 = vpack.c.bf16 %v326_v60, %v325_v59  ;;  %v396_v62 = vld [vmem:[#allocation8 + $0x1] ss:$0 sm:$0xff]  ;;  %v395_v63 = vld [vmem:[#allocation8] ss:$0 sm:$0xff] }
  0xb6   : > { %2155 = vmatprep.subr.bf16.mxu0 %v2567_v0  ;;  %692 = vmatprep.mubr.f32.mxu1 %v2569_v1 }
  0xb7   : > { %1980 = vmatprep.mubr.msk.f32.mxu0 %vm2568_vm0, %v2569_v1 }
  0xb8   : > { %2183 = vmatpush1.bf16.msra.mxu1 %v2182_v8  ;;  %v618_v8 = vlaneseq }
  0xb9   : > { %2157 = vmatpush3.bf16.msra.mxu0 %v2156_v9  ;;  %2185 = vmatprep.subr.bf16.mxu1 %v2184_v10 }
  0xba   : > { %2158 = vmatprep.subr.bf16.mxu0 %v2567_v0  ;;  %v619_v9 = vshrl.u32 %v618_v8, 7 }
  0xbc   : > { %2187 = vmatpush1.bf16.msra.mxu1 %v2186_v17  ;;  %v620_v10 = vsub.s32 0, %v619_v9  ;;  %v624_v22 = vsub.s32 1, %v619_v9 }
  0xbd   : > { %2160 = vmatpush3.bf16.msra.mxu0 %v2159_v18  ;;  %2189 = vmatprep.subr.bf16.mxu1 %v2188_v19 }
  0xbe   : > { %2161 = vmatprep.subr.bf16.mxu0 %v2567_v0  ;;  %v621_v12 = vrot.slane %v399_v11, %v620_v10  ;;  %v625_v24 = vrot.slane %v399_v11, %v624_v22  ;;  %v362_v22 = vld [vmem:[#allocation7 + $0x430] sm:$0xff] }
  0xc0   : > { %2191 = vmatpush1.bf16.msra.mxu1 %v2190_v26 }
  0xc1   : > { %2163 = vmatpush3.bf16.msra.mxu0 %v2162_v27  ;;  %2193 = vmatprep.subr.bf16.mxu1 %v2192_v28 }
  0xc2   : > { %2164 = vmatprep.subr.bf16.mxu0 %v2567_v0 }
  0xc4   : > { %2195 = vmatpush1.bf16.msra.mxu1 %v2194_v35 }
  0xc5   : > { %2166 = vmatpush3.bf16.msra.mxu0 %v2165_v36  ;;  %2197 = vmatprep.subr.bf16.mxu1 %v2196_v37 }
  0xc6   : > { %2167 = vmatprep.subr.bf16.mxu0 %v2567_v0 }
  0xc8   : > { %2199 = vmatpush1.bf16.msra.mxu1 %v2198_v44 }
  0xc9   : > { %2169 = vmatpush3.bf16.msra.mxu0 %v2168_v45  ;;  %2201 = vmatprep.subr.bf16.mxu1 %v2200_v46 }
  0xca   : > { %2170 = vmatprep.subr.bf16.mxu0 %v2567_v0 }
  0xcc   : > { %2203 = vmatpush1.bf16.msra.mxu1 %v2202_v53 }
  0xcd   : > { %2172 = vmatpush3.bf16.msra.mxu0 %v2171_v54  ;;  %2205 = vmatprep.subr.bf16.mxu1 %v2204_v55 }
  0xce   : > { %2173 = vmatprep.subr.bf16.mxu0 %v2567_v0 }
  0xd0   : > { %2207 = vmatpush1.bf16.msra.mxu1 %v2206_v58 }
  0xd1   : > { %1983 = vmatprep.subr.mxu1 %v2569_v1  ;;  %2175 = vmatpush3.bf16.msra.mxu0 %v2174_v61 }
  0xd2   : > { %1993 = vmatprep.subr.mxu0 %v2569_v1 }
 0x186   : > { %v543_v2 = vpop.f32.mrb[0].mxu1 }
 0x187   : > { %v544_v3 = vadd.f32 %v543_v2, %v396_v62  ;;  %v1947_v4 = vpop.f32.mrb[1].mxu1  ;;  %v472_v5 = vpop.f32.mrb[0].mxu0 }
 0x188   : > { %v2864_v6 = vadd.f32 %v472_v5, %v395_v63  ;;  %v1912_v7 = vpop.f32.mrb[1].mxu0 }
 0x189   : > { %693 = vmatmul.mubr.f32.vlgmr.msra.gmra.mrb[2].mxu1 %v544_v3 }
 0x18a   : > { %1981 = vmatmul.mubr.f32.vlgmr.msra.gmra.mrb[2].mxu0 %v2864_v6  ;;  %1985 = vmatprep.mubr.msk.f32.mxu1 %vm2568_vm0, %v2569_v1 }
 0x18b   : > { %1995 = vmatprep.mubr.msk.f32.mxu0 %vm2568_vm0, %v2569_v1 }
 0x25c   : > { %v694_v13 = vpop.f32.mrb[2].mxu1 }
 0x25d   : > { %v695_v15 = vadd.f32 %v694_v13, %v621_v12  ;;  %v696_v16 = vpop.f32.mrb[3].mxu1  ;;  %v613_v17 = vpop.f32.mrb[2].mxu0 }
 0x25e   : > { %v1982_v18 = vpop.f32.mrb[3].mxu0  ;;  %v614_v19 = vadd.f32 %v613_v17, %v397_v14  ;;  %v697_v27 = vadd.f32 %v696_v16, %v625_v24 }
 0x25f   : > { %709 = vrot.lane.b32.xlu1 %v695_v15, %s2570_s21  ;;  %707 = vrot.lane.b32.xlu0 %v695_v15, %s2571_s12  ;;  %v359_v18 = vld [vmem:[#allocation7 + $0x400] sm:$0xff] }
 0x260   : > { %1984 = vmatpush3.xpose.msk.msra.mxu1 %vm723_vm1, %v695_v15 }
 0x261   : > { %1988 = vmatprep.subr.mxu1 %v2569_v1 }
 0x263   : > { %1986 = vmatmul.mubr.msk.f32.vlgmr.msra.gmra.mrb[4].mxu1 %vm723_vm1, %v614_v19  ;;  %711 = vrot.lane.b32.xlu1 %v695_v15, %s2572_s24 }
 0x264   : > { %700 = vrot.lane.b32.xlu0 %v614_v19, %s2571_s12  ;;  %1990 = vmatprep.mubr.msk.f32.mxu1 %vm2568_vm0, %v2569_v1 }
 0x267   : > { %704 = vrot.lane.b32.xlu1 %v614_v19, %s2572_s24 }
 0x268   : > { %702 = vrot.lane.b32.xlu0 %v614_v19, %s2570_s21  ;;  %v360_v19 = vld [vmem:[#allocation7 + $0x410] sm:$0xff] }
 0x2d1   : > { %v710_v20 = vpop.permute.xlu1 %709  ;;  %v708_v21 = vpop.permute.xlu0 %707 }
 0x2d2   : > { %1989 = vmatpush3.xpose.msk.msra.mxu1 %vm723_vm1, %v708_v21  ;;  %1994 = vmatpush3.xpose.msk.msra.mxu0 %vm723_vm1, %v710_v20  ;;  %v2209_v20 = vpack.c.bf16 %v360_v19, %v359_v18  ;;  %v361_v21 = vld [vmem:[#allocation7 + $0x420] sm:$0xff] }
 0x2d3   : > { %1998 = vmatprep.subr.mxu1 %v2569_v1  ;;  %2003 = vmatprep.subr.mxu0 %v2569_v1 }
 0x2d5   : > { %v712_v23 = vpop.permute.xlu1 %711 }
 0x2d6   : > { %v701_v25 = vpop.permute.xlu0 %700 }
 0x2d7   : > { %1991 = vmatmul.mubr.msk.f32.vlgmr.msra.gmra.mrb[6].mxu1 %vm723_vm1, %v701_v25 }
 0x2d8   : > { %1999 = vmatpush3.xpose.msk.msra.mxu1 %vm723_vm1, %v712_v23  ;;  %2000 = vmatprep.mubr.msk.f32.mxu1 %vm2568_vm0, %v2569_v1  ;;  %v2212_v23 = vpack.c.bf16 %v362_v22, %v361_v21  ;;  %v403_v22 = vld [vmem:[#allocation8 + $0x7] ss:$0 sm:$0xff] }
 0x2d9   : > { %v705_v26 = vpop.permute.xlu1 %704  ;;  %2008 = vmatprep.subr.mxu1 %v2569_v1 }
 0x2da   : > { %v703_v28 = vpop.permute.xlu0 %702 }
 0x2db   : > { %1996 = vmatmul.mubr.msk.f32.vlgmr.msra.gmra.mrb[4].mxu0 %vm723_vm1, %v703_v28  ;;  %2001 = vmatmul.mubr.msk.f32.vlgmr.msra.gmra.mrb[8].mxu1 %vm723_vm1, %v705_v26 }
 0x2dc   : > { %2004 = vmatpush3.msra.mxu0 %v697_v27  ;;  %2005 = vmatprep.mubr.msk.f32.mxu0 %vm2568_vm0, %v2569_v1 }
 0x2dd   : > { %2013 = vmatprep.subr.mxu0 %v2569_v1  ;;  %2010 = vmatprep.mubr.msk.f32.mxu1 %vm2568_vm0, %v2569_v1 }
 0x336   : > { %v794_v29 = vpop.f32.mrb[4].mxu1 }
 0x337   : > { %v1987_v30 = vpop.f32.mrb[5].mxu1  ;;  %v1020_v31 = vsel %vm723_vm1, %v794_v29, -inf }
 0x338   : > { %1021 = vmax.xlane.f32.xlu0 %v1020_v31 }
 0x3aa   : > { %v868_v32 = vpop.f32.mrb[6].mxu1 }
 0x3ab   : > { %v1992_v33 = vpop.f32.mrb[7].mxu1  ;;  %v1023_v34 = vsel %vm723_vm1, %v868_v32, -inf }
 0x3ac   : > { %1024 = vmax.xlane.f32.xlu1 %v1023_v34 }
 0x3ae   : > { %v942_v35 = vpop.f32.mrb[4].mxu0  ;;  %v1016_v36 = vpop.f32.mrb[8].mxu1 }
 0x3af   : > { %v1997_v37 = vpop.f32.mrb[5].mxu0  ;;  %v2002_v38 = vpop.f32.mrb[9].mxu1  ;;  %v1026_v39 = vsel %vm723_vm1, %v942_v35, -inf  ;;  %v1029_v40 = vsel %vm723_vm1, %v1016_v36, -inf }
 0x3b0   : > { %1027 = vmax.xlane.f32.xlu0 %v1026_v39 }
 0x3b4   : > { %1030 = vmax.xlane.f32.xlu0 %v1029_v40 }
 0x3bd   : > { %714 = vrot.lane.b32.xlu1 %v697_v27, %s2571_s12 }
 0x3c5   : > { %v1022_v41 = vpop.xlane.xlu0 %1021 }
 0x3c6   : > { %v1032_v42 = vsub.f32 %v794_v29, %v1022_v41  ;;  %v363_v41 = vld [vmem:[#allocation7 + $0x440] sm:$0xff] }
 0x3c8   : > { %v1036_v43 = vmul.f32 1.442695, %v1032_v42  ;;  %v364_v42 = vld [vmem:[#allocation7 + $0x450] sm:$0xff] }
 0x3ca   : > { %2345 = vpow2.f32 %v1036_v43  ;;  %v365_v43 = vld [vmem:[#allocation7 + $0x460] sm:$0xff] }
 0x3d4   : > { %v2346_v44 = vpop.eup %2345 }
 0x3d5   : > { %v1044_v45 = vsel %vm723_vm1, %v2346_v44, 0.0 }
 0x3e1   : > { %1045 = vadd.xlane.f32.xlu1 %v1044_v45  ;;  %v366_v45 = vld [vmem:[#allocation7 + $0x470] sm:$0xff] }
 0x439   : > { %v1025_v46 = vpop.xlane.xlu1 %1024 }
 0x43a   : > { %v1033_v47 = vsub.f32 %v868_v32, %v1025_v46  ;;  %v2218_v46 = vpack.c.bf16 %v366_v45, %v365_v43 }
 0x43c   : > { %v1038_v48 = vmul.f32 1.442695, %v1033_v47  ;;  %v367_v47 = vld [vmem:[#allocation7 + $0x480] sm:$0xff] }
 0x43d   : > { %v715_v49 = vpop.permute.xlu1 %714  ;;  %v1028_v50 = vpop.xlane.xlu0 %1027 }
 0x43e   : > { %2347 = vpow2.f32 %v1038_v48  ;;  %v1034_v51 = vsub.f32 %v942_v35, %v1028_v50  ;;  %2009 = vmatpush3.msra.mxu1 %v715_v49  ;;  %v368_v48 = vld [vmem:[#allocation7 + $0x490] sm:$0xff] }
 0x43f   : > { %2018 = vmatprep.subr.mxu1 %v2569_v1  ;;  %v2221_v49 = vpack.c.bf16 %v368_v48, %v367_v47 }
 0x440   : > { %v1040_v52 = vmul.f32 1.442695, %v1034_v51 }
 0x441   : > { %v1031_v53 = vpop.xlane.xlu0 %1030 }
 0x442   : > { %2349 = vpow2.f32 %v1040_v52  ;;  %v1035_v54 = vsub.f32 %v1016_v36, %v1031_v53  ;;  %v400_v36 = vld [vmem:[#allocation8 + $0x4] ss:$0 sm:$0xff] }
 0x444   : > { %v1042_v55 = vmul.f32 1.442695, %v1035_v54 }
 0x446   : > { %2351 = vpow2.f32 %v1042_v55 }
 0x448   : > { %v2348_v56 = vpop.eup %2347 }
 0x449   : > { %v1047_v57 = vsel %vm723_vm1, %v2348_v56, 0.0 }
 0x44a   : > { %1048 = vadd.xlane.f32.xlu0 %v1047_v57  ;;  %v370_v57 = vld [vmem:[#allocation7 + $0x4b0] sm:$0xff] }
 0x44c   : > { %v2350_v58 = vpop.eup %2349 }
 0x44d   : > { %v1050_v59 = vsel %vm723_vm1, %v2350_v58, 0.0 }
 0x44e   : > { %1051 = vadd.xlane.f32.xlu1 %v1050_v59  ;;  %v371_v59 = vld [vmem:[#allocation7 + $0x4c0] sm:$0xff] }
 0x450   : > { %v2352_v60 = vpop.eup %2351 }
 0x451   : > { %v1053_v61 = vsel %vm723_vm1, %v2352_v60, 0.0 }
 0x452   : > { %1054 = vadd.xlane.f32.xlu0 %v1053_v61  ;;  %v373_v61 = vld [vmem:[#allocation7 + $0x4e0] sm:$0xff] }
 0x45f   : > { %720 = vrot.lane.b32.xlu1 %v697_v27, %s2572_s24 }
 0x468   : > { %717 = vrot.lane.b32.xlu0 %v697_v27, %s2570_s21 }
 0x46e   : > { %v1046_v62 = vpop.xlane.xlu1 %1045 }
 0x46f   : > { %2353 = vrcp.f32 %v1046_v62 }
 0x479   : > { %v2354_v63 = vpop.eup %2353 }
 0x47a   : > { %v1060_v2 = vmul.f32 %v2354_v63, %v2346_v44  ;;  %v2215_v44 = vpack.c.bf16 %v364_v42, %v363_v41  ;;  %v401_v42 = vld [vmem:[#allocation8 + $0x5] ss:$0 sm:$0xff] }
 0x47c   : > { %2006 = vmatmul.mubr.msk.f32.vlgmr.msra.gmra.mrb[6].mxu0 %vm723_vm1, %v1060_v2  ;;  %v376_v2 = vld [vmem:[#allocation7 + $0x510] sm:$0xff] }
 0x47d   : > { %2015 = vmatprep.mubr.msk.f32.mxu0 %vm2568_vm0, %v2569_v1 }
 0x4d7   : > { %v1049_v3 = vpop.xlane.xlu0 %1048 }
 0x4d8   : > { %2355 = vrcp.f32 %v1049_v3 }
 0x4db   : > { %v1052_v4 = vpop.xlane.xlu1 %1051 }
 0x4dc   : > { %2357 = vrcp.f32 %v1052_v4  ;;  %v377_v4 = vld [vmem:[#allocation7 + $0x520] sm:$0xff] }
 0x4df   : > { %v1055_v5 = vpop.xlane.xlu0 %1054  ;;  %v721_v11 = vpop.permute.xlu1 %720 }
 0x4e0   : > { %2359 = vrcp.f32 %v1055_v5  ;;  %v378_v5 = vld [vmem:[#allocation7 + $0x530] sm:$0xff] }
 0x4e2   : > { %v2356_v7 = vpop.eup %2355 }
 0x4e3   : > { %v1061_v9 = vmul.f32 %v2356_v7, %v2348_v56  ;;  %v718_v10 = vpop.permute.xlu0 %717  ;;  %v369_v56 = vld [vmem:[#allocation7 + $0x4a0] sm:$0xff]  ;;  %v2236_v7 = vpack.c.bf16 %v378_v5, %v377_v4 }
 0x4e4   : > { %2014 = vmatpush3.msra.mxu0 %v718_v10  ;;  %v380_v10 = vld [vmem:[#allocation7 + $0x550] sm:$0xff] }
 0x4e5   : > { %2011 = vmatmul.mubr.msk.f32.vlgmr.msra.gmra.mrb[10].mxu1 %vm723_vm1, %v1061_v9  ;;  %2208 = vmatprep.subr.bf16.mxu0 %v2567_v0  ;;  %v379_v9 = vld [vmem:[#allocation7 + $0x540] sm:$0xff] }
 0x4e6   : > { %v2358_v12 = vpop.eup %2357  ;;  %2019 = vmatpush3.msra.mxu1 %v721_v11  ;;  %2020 = vmatprep.mubr.msk.f32.mxu1 %vm2568_vm0, %v2569_v1  ;;  %v381_v11 = vld [vmem:[#allocation7 + $0x560] sm:$0xff] }
 0x4e7   : > { %v1062_v13 = vmul.f32 %v2358_v12, %v2350_v58  ;;  %2214 = vmatprep.subr.bf16.mxu1 %v2567_v0  ;;  %v2224_v58 = vpack.c.bf16 %v370_v57, %v369_v56  ;;  %v2239_v12 = vpack.c.bf16 %v380_v10, %v379_v9 }
 0x4e9   : > { %2016 = vmatmul.mubr.msk.f32.vlgmr.msra.gmra.mrb[8].mxu0 %vm723_vm1, %v1062_v13  ;;  %v382_v13 = vld [vmem:[#allocation7 + $0x570] sm:$0xff] }
 0x4ea   : > { %v2360_v14 = vpop.eup %2359  ;;  %2031 = vmatprep.mubr.msk.f32.mxu0 %vm2568_vm0, %v2569_v1  ;;  %2210 = vmatpush3.bf16.msra.mxu0 %v2209_v20 }
 0x4eb   : > { %v1063_v15 = vmul.f32 %v2360_v14, %v2352_v60  ;;  %2211 = vmatprep.subr.bf16.mxu0 %v2567_v0  ;;  %v372_v60 = vld [vmem:[#allocation7 + $0x4d0] sm:$0xff]  ;;  %v2242_v14 = vpack.c.bf16 %v382_v13, %v381_v11 }
 0x4ec   : > { %v2227_v62 = vpack.c.bf16 %v372_v60, %v371_v59 }
 0x4ed   : > { %2021 = vmatmul.mubr.msk.f32.vlgmr.msra.gmra.mrb[12].mxu1 %vm723_vm1, %v1063_v15  ;;  %v383_v15 = vld [vmem:[#allocation7 + $0x580] sm:$0xff] }
 0x4ee   : > { %2066 = vmatprep.mubr.msk.f32.mxu1 %vm2568_vm0, %v2569_v1  ;;  %2213 = vmatpush3.bf16.msra.mxu0 %v2212_v23 }
 0x4ef   : > { %2238 = vmatprep.subr.bf16.mxu0 %v2567_v0  ;;  %2216 = vmatpush3.bf16.msra.mxu1 %v2215_v44 }
 0x4f0   : > { %2217 = vmatprep.subr.bf16.mxu1 %v2567_v0 }
 0x4f3   : > { %2219 = vmatpush3.bf16.msra.mxu1 %v2218_v46 }
 0x4f4   : > { %2220 = vmatprep.subr.bf16.mxu1 %v2567_v0 }
 0x4f7   : > { %2222 = vmatpush3.bf16.msra.mxu1 %v2221_v49 }
 0x4f8   : > { %2223 = vmatprep.subr.bf16.mxu1 %v2567_v0 }
 0x4fb   : > { %2225 = vmatpush3.bf16.msra.mxu1 %v2224_v58 }
 0x4fc   : > { %2226 = vmatprep.subr.bf16.mxu1 %v2567_v0 }
 0x4ff   : > { %2228 = vmatpush3.bf16.msra.mxu1 %v2227_v62 }
 0x500   : > { %2229 = vmatprep.subr.bf16.mxu1 %v2567_v0 }
 0x54f   : > { %v1133_v16 = vpop.f32.mrb[6].mxu0 }
 0x550   : > { %v2007_v17 = vpop.f32.mrb[7].mxu0 }
 0x5b8   : > { %v1206_v24 = vpop.f32.mrb[10].mxu1 }
 0x5b9   : > { %1357 = vrot.lane.b32.xlu1 %v1206_v24, %s2573_s20  ;;  %v2012_v25 = vpop.f32.mrb[11].mxu1  ;;  %v404_v24 = vld [vmem:[#allocation8 + $0x10] ss:$0 sm:$0xff] }
 0x5bc   : > { %v1279_v26 = vpop.f32.mrb[8].mxu0 }
 0x5bd   : > { %1361 = vrot.lane.b32.xlu0 %v1279_v26, %s2574_s11  ;;  %v2017_v27 = vpop.f32.mrb[9].mxu0 }
 0x5be   : > { %v385_v27 = vld [vmem:[#allocation7 + $0x5a0] sm:$0xff] }
 0x5c0   : > { %v1352_v28 = vpop.f32.mrb[12].mxu1 }
 0x5c1   : > { %1365 = vrot.lane.b32.xlu1 %v1352_v28, %s2575_s25  ;;  %v2022_v29 = vpop.f32.mrb[13].mxu1  ;;  %v386_v28 = vld [vmem:[#allocation7 + $0x5b0] sm:$0xff] }
 0x5c2   : > { %v2248_v29 = vpack.c.bf16 %v386_v28, %v385_v27 }
 0x62b   : > { %v1358_v30 = vpop.permute.xlu1 %1357 }
 0x62c   : > { %v1368_v32 = vsel %vm723_vm1, %v1133_v16, %v1358_v30  ;;  %v384_v16 = vld [vmem:[#allocation7 + $0x590] sm:$0xff]  ;;  %v387_v30 = vld [vmem:[#allocation7 + $0x5c0] sm:$0xff] }
 0x62d   : > { %v2245_v17 = vpack.c.bf16 %v384_v16, %v383_v15 }
 0x62f   : > { %v1362_v31 = vpop.permute.xlu0 %1361 }
 0x630   : > { %v1370_v33 = vsel %vm1369_vm2, %v1368_v32, %v1362_v31  ;;  %v388_v31 = vld [vmem:[#allocation7 + $0x5d0] sm:$0xff] }
 0x631   : > { %v2251_v32 = vpack.c.bf16 %v388_v31, %v387_v30 }
 0x633   : > { %v1366_v34 = vpop.permute.xlu1 %1365 }
 0x634   : > { %v1372_v35 = vsel %vm1371_vm3, %v1370_v33, %v1366_v34  ;;  %v389_v33 = vld [vmem:[#allocation7 + $0x5e0] sm:$0xff]  ;;  %v390_v34 = vld [vmem:[#allocation7 + $0x5f0] sm:$0xff] }
 0x635   : > { %2032 = vmatmul.mubr.msk.f32.vlgmr.msra.gmra.mrb[10].mxu0 %vm1373_vm4, %v1372_v35  ;;  %v2254_v35 = vpack.c.bf16 %v390_v34, %v389_v33 }
 0x636   : > { %2101 = vmatprep.mubr.msk.f32.mxu0 %vm2568_vm0, %v2569_v1  ;;  %2240 = vmatpush3.bf16.msra.mxu0 %v2239_v12 }
 0x637   : > { %2241 = vmatprep.subr.bf16.mxu0 %v2567_v0 }
 0x63a   : > { %2243 = vmatpush3.bf16.msra.mxu0 %v2242_v14 }
 0x63b   : > { %2244 = vmatprep.subr.bf16.mxu0 %v2567_v0 }
 0x63e   : > { %2246 = vmatpush3.bf16.msra.mxu0 %v2245_v17 }
 0x63f   : > { %2247 = vmatprep.subr.bf16.mxu0 %v2567_v0 }
 0x642   : > { %2249 = vmatpush3.bf16.msra.mxu0 %v2248_v29 }
 0x643   : > { %2250 = vmatprep.subr.bf16.mxu0 %v2567_v0 }
 0x646   : > { %2252 = vmatpush3.bf16.msra.mxu0 %v2251_v32 }
 0x647   : > { %2253 = vmatprep.subr.bf16.mxu0 %v2567_v0 }
 0x64a   : > { %2255 = vmatpush3.bf16.msra.mxu0 %v2254_v35 }
 0x64b   : > { %2256 = vmatprep.subr.bf16.mxu0 %v2567_v0 }
 0x708   : > { %v1443_v37 = vpop.f32.mrb[10].mxu0 }
 0x709   : > { %v1444_v38 = vadd.f32 %v1443_v37, %v400_v36  ;;  %v2033_v39 = vpop.f32.mrb[11].mxu0  ;;  %v391_v36 = vld [vmem:[#allocation7 + $0x600] sm:$0xff]  ;;  %v392_v37 = vld [vmem:[#allocation7 + $0x610] sm:$0xff] }
 0x70a   : > { %v393_v39 = vld [vmem:[#allocation7 + $0x620] sm:$0xff] }
 0x70b   : > { %v1447_v40 = vadd.f32 %v1444_v38, %v2864_v6  ;;  %v1449_v6 = vand.u32 127, %v618_v8  ;;  %v374_v8 = vld [vmem:[#allocation7 + $0x4f0] sm:$0xff]  ;;  %v2257_v38 = vpack.c.bf16 %v392_v37, %v391_v36 }
 0x70c   : > { %v2230_v63 = vpack.c.bf16 %v374_v8, %v373_v61 }
 0x70d   : > { %1453 = vadd.xlane.f32.xlu0 %v1447_v40  ;;  %vm1450_vm5 = vcmp.lt.s32.totalorder %v1449_v6, 32  ;;  %2258 = vmatpush3.bf16.msra.mxu0 %v2257_v38 }
 0x70e   : > { %v1767_v52 = vsel %vm1450_vm5, 1.0, %v2569_v1  ;;  %v375_v1 = vld [vmem:[#allocation7 + $0x500] sm:$0xff]  ;;  %2231 = vmatpush3.bf16.msra.mxu1 %v2230_v63  ;;  %2259 = vmatprep.subr.bf16.mxu0 %v2567_v0 }
 0x70f   : > { %v2233_v3 = vpack.c.bf16 %v376_v2, %v375_v1  ;;  %2232 = vmatprep.subr.bf16.mxu1 %v2567_v0 }
 0x712   : > { %2234 = vmatpush3.bf16.msra.mxu1 %v2233_v3 }
 0x713   : > { %2235 = vmatprep.subr.bf16.mxu1 %v2567_v0  ;;  %v402_v0 = vld [vmem:[#allocation8 + $0x6] ss:$0 sm:$0xff] }
 0x716   : > { %2237 = vmatpush3.bf16.msra.mxu1 %v2236_v7 }
 0x79a   : > { %v1454_v50 = vpop.xlane.xlu0 %1453 }
 0x79b   : > { %v1455_v51 = vmul.f32 0.03125, %v1454_v50 }
 0x79d   : > { %v1456_v53 = vsub.f32 %v1447_v40, %v1455_v51  ;;  %v394_v40 = vld [vmem:[#allocation7 + $0x630] sm:$0xff] }
 0x79e   : > { %v2260_v41 = vpack.c.bf16 %v394_v40, %v393_v39 }
 0x79f   : > { %v1457_v54 = vmul.f32 %v1767_v52, %v1456_v53 }
 0x7a0   : > { %2261 = vmatpush3.bf16.msra.mxu0 %v2260_v41 }
 0x7a1   : > { %v1458_v55 = vmul.f32 %v1457_v54, %v1457_v54 }
 0x7a3   : > { %1459 = vadd.xlane.f32.xlu1 %v1458_v55 }
 0x830   : > { %v1460_v18 = vpop.xlane.xlu1 %1459 }
 0x831   : > { %v1461_v19 = vmul.f32 0.03125, %v1460_v18 }
 0x833   : > { %v1462_v20 = vadd.f32 1e-05, %v1461_v19 }
 0x835   : > { %2361 = vrsqrt.f32 %v1462_v20 }
 0x83f   : > { %v2362_v21 = vpop.eup %2361 }
 0x840   : > { %v1464_v23 = vmul.f32 %v2362_v21, %v1457_v54 }
 0x842   : > { %v1465_v25 = vmul.f32 %v1464_v23, %v403_v22 }
 0x844   : > { %v1466_v26 = vadd.f32 %v1465_v25, %v404_v24 }
 0x846   : > { %2067 = vmatmul.mubr.f32.vlgmr.msra.gmra.mrb[14].mxu1 %v1466_v26 }
 0x919   : > { %v1533_v43 = vpop.f32.mrb[14].mxu1 }
 0x91a   : > { %v1534_v44 = vadd.f32 %v1533_v43, %v401_v42  ;;  %v2068_v45 = vpop.f32.mrb[15].mxu1 }
 0x91c   : > { %v1538_v46 = vmul.f32 0.70710677, %v1534_v44  ;;  %v1537_v48 = vmul.f32 0.5, %v1534_v44 }
 0x91e   : > { %2363 = verf.f32 %v1538_v46 }
 0x928   : > { %v2364_v47 = vpop.eup %2363 }
 0x929   : > { %v1540_v49 = vadd.f32 1.0, %v2364_v47 }
 0x92b   : > { %v1541_v6 = vmul.f32 %v1540_v49, %v1537_v48 }
 0x92d   : > { %2102 = vmatmul.mubr.f32.vlgmr.msra.gmra.mrb[12].mxu0 %v1541_v6 }
 0xa00   : > { %v1608_v50 = vpop.f32.mrb[12].mxu0 }
 0xa01   : > { %v1609_v51 = vadd.f32 %v1608_v50, %v402_v0  ;;  %v2103_v52 = vpop.f32.mrb[13].mxu0 }
 0xa03   : > { %1612 = vst [vmem:[%s278_s28] sm:$0xff] %v1609_v51 }
 0xa04   : > { %2494 = shalt.err (!%p2491_p7)
}
 0xa05   : > { %s2495_s26 = scalar_lea.hbm %s2952_s29, 128  ;;  %s2499_s12 = scalar_lea.hbm %s3000_s4, 256 }
 0xa06   : > { %p2496_p1 = scmp.ne.s32.totalorder %s2952_s29, %s2495_s26  ;;  %p2500_p0 = scmp.lt.u32.totalorder %s2952_s29, %s3000_s4 }
 0xa07   : > { %p2501_p9 = scmp.lt.u32.totalorder %s2499_s12, %s2495_s26  ;;  %p2503_p2 = scmp.lt.u32.totalorder %s2495_s26, %s2952_s29 }
 0xa08   : > { %p2497_p8 = pnand %p2496_p1, %p3020_p13 }
 0xa09   : > { %p2502_p12 = por %p2501_p9, %p2500_p0 }
 0xa0a   : > { %p2498_p11 = pneg %p2497_p8 }
 0xa0b   : > { %p2504_p6 = por %p2503_p2, %p2502_p12 }
 0xa0d   : > { %p2505_p10 = pnand %p2504_p6, %p2498_p11 }
 0xa0f   : > { %2508 = shalt.err (!%p2505_p10)
}
 0xa10   : > { %2274 = dma.vmem_to_hbm [thread:$0]  (%p3020_p13), %s2954_s27, 128, %s2952_s29, %s1614_s6  }
 0xa11 PF: > { %s1639_s11 = sand.u32 1, %s2547_s15   ;;  %p3021_p4 = scmp.ne.s32.totalorder %s3007_s22, 0 }
 0xa12   : > { %p3022_p5 = scmp.ge.s32.totalorder %s2559_s18, 2  ;;  %s1640_s25 = scalar_lea.sflag [#allocation4], %s1639_s11 }
 0xa14   : > { %p2291_p3 = pnand %p3022_p5, %p3021_p4 }
 0xa16   : > { %2542 = dma.done.wait (!%p2291_p3), %s1640_s25, 128  }
 0xa17   : > { %2544 = vsyncadd (!%p2291_p3), %s1640_s25, 4294967168  ;;  %p21_p7 = scmp.ge.s32.totalorder %s2712_s9, 4   ;;  %s3023_s15 = smov %s2551_s16 }
 0xa18   : > { %s3024_s16 = smov %s2555_s17  ;;  %s3025_s17 = smov %s2728_s14 }
 0xa19   : > { %s3026_s18 = smov %s2712_s9  ;;  %23 = sbr.rel (!%p21_p7) target bundleno = 10 (0xa), region = 103 }
 0xa20   :  { %1645 = vsyncpa [#allocation3], 1 }
 0xa21   :  { %1647 = vsyncpa [#allocation3 + $0x1], 1 }
 0xa22   :  { %1648 = vsyncpa [#allocation6], 1 }
 0xa23   :  { %1650 = vsyncpa [#allocation6 + $0x1], 1 }
 0xa24   :  { %1651 = vsyncpa [#allocation9], 1 }
 0xa25   :  { %1652 = vsyncpa [#allocation4], 1 }
 0xa26   :  { %1654 = vsyncpa [#allocation4 + $0x1], 1 }

</bundles_post_ra>
